<compile_context>
chip_gen: v7x
topology: tpu7x:2x2x1
jax: 0.10.0
libtpu: 0.0.40
codegen_flags: <defaults>
</compile_context>

<pallas_src>
import functools
import numpy as np

import jax
import jax.numpy as jnp
from jax import lax
from jax.experimental import pallas as pl
from jax.experimental.pallas import tpu as pltpu


# --------------------------------------------------------------------------
# kernel
# --------------------------------------------------------------------------
def _sssm_kernel(rates_ref, x_ref, halo_ref, mask_ref,
                 mf_ref, bf_ref, wd_ref, bd_ref, out_ref, *scratch,
                 W, kconv, halo, r_pad, variant, matmul_dtype):
    """One (row-tile, batch) grid step.

    x_ref    : (1, C, TILE_HW)      f32 spatial tile of x (residual + matmul LHS)
    halo_ref : (1, C, HALO_PAD)     f32 [left | right | 0-pad] halo columns
    mask_ref : (1, K2, TILE_HW)     0/1 boundary masks (matmul dtype)
    mf/bf    : fused (q,k,v 1x1 convs + fc + permute) weight / bias
    wd       : grouped dep_conv weights; (K2, C, r_pad) for "pertap",
               (C, K2*r_pad) for "stacked"
    scratch  : () for "pertap", (stacked_ref,) for "stacked"
    """
    thw = x_ref.shape[2]

    x_f32 = x_ref[0]                                    # (C, THW) f32 residual
    x_mm = x_f32.astype(matmul_dtype)                   # cast in-kernel only
    halo_mm = halo_ref[0].astype(matmul_dtype)          # (C, HALO_PAD)

    # f_conv on the lane-aligned tile (big matmul) + on the tiny halo block.
    f_cur = (jnp.dot(mf_ref[...], x_mm, preferred_element_type=jnp.float32)
             + bf_ref[...]).astype(matmul_dtype)        # (r_pad, THW)
    f_hal = (jnp.dot(mf_ref[...], halo_mm, preferred_element_type=jnp.float32)
             + bf_ref[...]).astype(matmul_dtype)        # (r_pad, HALO_PAD)
    f_left = f_hal[:, :halo]
    f_right = f_hal[:, halo:2 * halo]

    masks = mask_ref[0]                                  # (K2, THW)

    def tap_piece(s):
        # Columns [s, s+THW) of [f_left | f_cur | f_right] (tile coordinates).
        if s == 0:
            return f_cur
        if s < 0:
            return jnp.concatenate([f_left[:, halo + s:], f_cur[:, :thw + s]],
                                   axis=1)
        return jnp.concatenate([f_cur[:, s:], f_right[:, :s]], axis=1)

    if variant == "stacked":
        # Single fused grouped-conv matmul against a materialized stacked RHS.
        stacked_ref, = scratch
        for ky in range(kconv):
            for kx in range(kconv):
                tap = ky * kconv + kx
                s = (ky - kconv // 2) * W + (kx - kconv // 2)
                stacked_ref[tap * r_pad:(tap + 1) * r_pad, :] = (
                    tap_piece(s) * masks[tap:tap + 1, :]
                ).astype(stacked_ref.dtype)
        out_conv = (jnp.dot(wd_ref[...], stacked_ref[...],
                            preferred_element_type=jnp.float32) + bd_ref[...])
    else:
        # "pertap": 9 small matmuls accumulated in f32, no scratch round-trip.
        # Masking is per-column so it commutes with the matmul -> apply it to
        # the (C, THW) result instead of the larger (r_pad, THW) operand.
        acc = None
        for ky in range(kconv):
            for kx in range(kconv):
                tap = ky * kconv + kx
                s = (ky - kconv // 2) * W + (kx - kconv // 2)
                contrib = jnp.dot(wd_ref[tap], tap_piece(s),
                                  preferred_element_type=jnp.float32)
                contrib = contrib * masks[tap:tap + 1, :]
                acc = contrib if acc is None else acc + contrib
        out_conv = acc + bd_ref[...]

    out_ref[0] = (rates_ref[0] * x_f32 + rates_ref[1] * out_conv
                  ).astype(out_ref.dtype)


# --------------------------------------------------------------------------
# host-side (one-time) parameter folding -- fully vectorized numpy
# --------------------------------------------------------------------------
def _build_fused_weights(w1, b1, w2, b2, w3, b3, wfc, wd,
                         head, head_dim, C, kconv, r_pad):
    K2 = kconv * kconv
    R = head_dim * K2

    wfc_np = np.asarray(wfc, np.float32)                # (K2, 3*head)
    wd_np = np.asarray(wd, np.float32)                  # (C, K2, kconv, kconv)

    # fc + permute/reshape as a matrix on the concatenated qkv channels:
    #   M[d*K2+j, t*C + hd*head_dim + d] = wfc[j, t*head + hd]
    M = np.zeros((R, 3 * C), np.float32)
    d, j, t, hd = np.ix_(np.arange(head_dim), np.arange(K2),
                         np.arange(3), np.arange(head))
    M[d * K2 + j, t * C + hd * head_dim + d] = wfc_np[j, t * head + hd]

    Wcat = np.concatenate([np.asarray(w1, np.float32),
                           np.asarray(w2, np.float32),
                           np.asarray(w3, np.float32)], axis=0)   # (3C, C)
    bcat = np.concatenate([np.asarray(b1, np.float32),
                           np.asarray(b2, np.float32),
                           np.asarray(b3, np.float32)], axis=0)   # (3C,)

    # Fold the three 1x1 convs into M:  f_conv = Mf @ x + bf
    Mf = np.zeros((r_pad, C), np.float32)
    Mf[:R] = M @ Wcat
    bf = np.zeros((r_pad, 1), np.float32)
    bf[:R, 0] = M @ bcat

    # Grouped 3x3 dep_conv: one (C, r_pad) matrix per tap.  Output channel co
    # is in group g = co // head whose f_conv rows are g*K2 .. g*K2 + K2 - 1.
    Wd_taps = np.zeros((K2, C, r_pad), np.float32)
    tap, co, j2 = np.ix_(np.arange(K2), np.arange(C), np.arange(K2))
    g = co // head
    ky, kx = tap // kconv, tap % kconv
    Wd_taps[tap, co, g * K2 + j2] = wd_np[co, j2, ky, kx]

    return Mf, bf, Wd_taps


def _build_masks(H, W, T, tile_hw, kconv):
    """0/1 validity mask of each 3x3 tap per output position, per row-tile."""
    K2 = kconv * kconv
    p = np.arange(H * W)
    y, x = p // W, p % W
    masks = np.zeros((K2, H * W), np.float32)
    for ky in range(kconv):
        for kx in range(kconv):
            dy, dx = ky - kconv // 2, kx - kconv // 2
            masks[ky * kconv + kx] = ((y + dy >= 0) & (y + dy < H) &
                                      (x + dx >= 0) & (x + dx < W))
    return masks.reshape(K2, T, tile_hw).transpose(1, 0, 2)   # (T, K2, TILE_HW)


def _choose_tile_h(H, W, kconv, max_lanes=4096):
    """Largest row-tile whose flattened width is lane-dense (multiple of 128)
    and within a generation-aware lane budget."""
    halo = (kconv // 2) * (W + 1)
    cands = [th for th in range(1, H + 1)
             if H % th == 0 and (th * W) % 128 == 0
             and halo <= th * W <= max_lanes]
    return max(cands) if cands else H


def _vmem_budget():
    """(vmem_limit_bytes, max tile lanes) -- generation aware."""
    cap = 64 * 1024 * 1024
    try:
        cap = int(pltpu.get_tpu_info().vmem_capacity_bytes)
    except Exception:
        pass
    if cap >= 96 * 1024 * 1024:                       # v5e / v6e (128 MiB VMEM)
        return min(100 * 1024 * 1024, (cap * 4) // 5), 16384
    return min(48 * 1024 * 1024, (cap * 3) // 4), 4096   # v7x (64 MiB VMEM)


# --------------------------------------------------------------------------
# wrapper
# --------------------------------------------------------------------------
def sssm_forward(x, params, *, head, kernel_conv=3, tile_h=None,
                 matmul_dtype=jnp.bfloat16, out_dtype=jnp.float32,
                 variant="pertap", single_buffer_weights=True):
    """Pallas-TPU forward of SSSM (stride == 1 only)."""
    B, C, H, W = x.shape
    head_dim = C // head
    K2 = kernel_conv * kernel_conv
    HW = H * W
    R = head_dim * K2
    # pad f_conv channels to the sublane packing of the matmul dtype
    pack = 32 // jnp.dtype(matmul_dtype).itemsize
    r_pad = ((R + pack - 1) // pack) * pack

    w1, b1, w2, b2, w3, b3, wfc, wd, bd, rate1, rate2 = params

    vmem_limit, max_lanes = _vmem_budget()
    TILE_H = (_choose_tile_h(H, W, kernel_conv, max_lanes)
              if tile_h is None else tile_h)
    assert H % TILE_H == 0, "tile_h must divide H"
    TILE_HW = TILE_H * W
    T = H // TILE_H
    assert TILE_HW % 128 == 0 or TILE_HW == HW, \
        "flattened tile width should be a multiple of 128 (perf cliff otherwise)"
    halo = (kernel_conv // 2) * (W + 1)
    assert halo <= TILE_HW, "tile too small for the conv halo"
    HALO_PAD = max(128, ((2 * halo + 127) // 128) * 128)   # lane-dense halo block

    Mf, bf_, Wd_taps = _build_fused_weights(w1, b1, w2, b2, w3, b3, wfc, wd,
                                            head, head_dim, C, kernel_conv,
                                            r_pad)
    masks = _build_masks(H, W, T, TILE_HW, kernel_conv)

    # x stays f32 in HBM: the kernel casts right before the MXU and the
    # rate1*x residual uses the exact f32 values.
    x_flat = x.reshape(B, C, HW)

    # Tiny side input holding each tile's [left | right] flattened halo columns
    # (zeros outside the image; those taps are masked anyway), lane-padded.
    x_pad = jnp.pad(x_flat, ((0, 0), (0, 0), (halo, halo)))
    halo_tiles = []
    for t in range(T):
        left = x_pad[:, :, t * TILE_HW: t * TILE_HW + halo]
        right = x_pad[:, :, (t + 1) * TILE_HW + halo:
                      (t + 1) * TILE_HW + 2 * halo]
        halo_tiles.append(jnp.concatenate([left, right], axis=-1))
    x_halo = jnp.stack(halo_tiles, axis=1).reshape(B * T, C, 2 * halo)
    x_halo = jnp.pad(x_halo, ((0, 0), (0, 0), (0, HALO_PAD - 2 * halo)))

    rates = jnp.asarray([rate1, rate2], jnp.float32)

    if variant == "stacked":
        wd_arg = jnp.asarray(Wd_taps.transpose(1, 0, 2).reshape(C, K2 * r_pad),
                             matmul_dtype)
        wd_shape = (C, K2 * r_pad)
        scratch = [pltpu.VMEM((K2 * r_pad, TILE_HW), matmul_dtype)]
    else:
        wd_arg = jnp.asarray(Wd_taps, matmul_dtype)
        wd_shape = (K2, C, r_pad)
        scratch = []

    kernel = functools.partial(_sssm_kernel, W=W, kconv=kernel_conv, halo=halo,
                               r_pad=r_pad, variant=variant,
                               matmul_dtype=matmul_dtype)

    args = (rates,
            x_flat,
            x_halo,
            jnp.asarray(masks, matmul_dtype),
            jnp.asarray(Mf, matmul_dtype),
            jnp.asarray(bf_, jnp.float32),
            wd_arg,
            jnp.asarray(bd, jnp.float32).reshape(C, 1))

    def run(single_buffer):
        def const_spec(shape):
            zeros = (0,) * len(shape)
            if single_buffer:
                # grid-invariant weights: single-buffer to reclaim VMEM (v7x)
                return pl.BlockSpec(shape, lambda t, b: zeros,
                                    pipeline_mode=pl.Buffered(buffer_count=1))
            return pl.BlockSpec(shape, lambda t, b: zeros)

        return pl.pallas_call(
            kernel,
            out_shape=jax.ShapeDtypeStruct((B, C, HW), out_dtype),
            # B innermost: the t-indexed mask block is only re-fetched when the
            # row-tile changes, not every grid step.
            grid=(T, B),
            in_specs=[
                pl.BlockSpec(memory_space=pltpu.SMEM),                    # rates
                pl.BlockSpec((1, C, TILE_HW), lambda t, b: (b, 0, t)),    # x
                pl.BlockSpec((1, C, HALO_PAD),
                             lambda t, b: (b * T + t, 0, 0)),             # halo
                pl.BlockSpec((1, K2, TILE_HW), lambda t, b: (t, 0, 0)),   # masks
                const_spec((r_pad, C)),                                   # Mf
                const_spec((r_pad, 1)),                                   # bf
                const_spec(wd_shape),                                     # Wd
                const_spec((C, 1)),                                       # bd
            ],
            out_specs=pl.BlockSpec((1, C, TILE_HW), lambda t, b: (b, 0, t)),
            scratch_shapes=scratch,
            compiler_params=pltpu.CompilerParams(
                dimension_semantics=("parallel", "parallel"),
                vmem_limit_bytes=vmem_limit),
        )(*args)

    if single_buffer_weights:
        try:
            out_flat = run(True)
        except Exception:
            # pl.Buffered(1) not supported on this jax/backend -> default bufs
            out_flat = run(False)
    else:
        out_flat = run(False)

    return out_flat.reshape(B, C, H, W)


# --------------------------------------------------------------------------
# pure-JAX reference (matches the PyTorch forward exactly)
# --------------------------------------------------------------------------
def sssm_reference(x, params, *, head, kernel_conv=3):
    B, C, H, W = x.shape
    head_dim = C // head
    hw = H * W
    w1, b1, w2, b2, w3, b3, wfc, wd, bd, rate1, rate2 = params

    conv1x1 = lambda wt, bi: (jnp.einsum('oi,bihw->bohw', wt, x)
                              + bi[None, :, None, None])
    q, k, v = conv1x1(w1, b1), conv1x1(w2, b2), conv1x1(w3, b3)

    cat = jnp.concatenate([q.reshape(B, head, head_dim, hw),
                           k.reshape(B, head, head_dim, hw),
                           v.reshape(B, head, head_dim, hw)], axis=1)
    f_all = jnp.einsum('jc,bcdp->bjdp', wfc, cat)
    f_conv = jnp.transpose(f_all, (0, 2, 1, 3)).reshape(
        B, head_dim * kernel_conv * kernel_conv, H, W)
    pad = kernel_conv // 2
    out_conv = lax.conv_general_dilated(
        f_conv, wd, window_strides=(1, 1), padding=((pad, pad), (pad, pad)),
        feature_group_count=head_dim,
        dimension_numbers=('NCHW', 'OIHW', 'NCHW')) + bd[None, :, None, None]
    return rate1 * x + rate2 * out_conv


# --------------------------------------------------------------------------
if __name__ == "__main__":
    # small but representative shapes: in_planes=8, head=4 -> head_dim=2
    B, C, H, W = 2, 8, 16, 16
    head, kernel_conv = 4, 3
    K2 = kernel_conv * kernel_conv

    key = jax.random.PRNGKey(0)
    ks = jax.random.split(key, 8)
    x = jax.random.normal(ks[0], (B, C, H, W), jnp.float32)

    w1 = jax.random.normal(ks[1], (C, C), jnp.float32) * 0.1
    b1 = jax.random.normal(ks[2], (C,), jnp.float32) * 0.1
    w2 = jax.random.normal(ks[3], (C, C), jnp.float32) * 0.1
    b2 = jax.random.normal(ks[4], (C,), jnp.float32) * 0.1
    w3 = jax.random.normal(ks[5], (C, C), jnp.float32) * 0.1
    b3 = jax.random.normal(ks[6], (C,), jnp.float32) * 0.1
    wfc = jax.random.normal(ks[7], (K2, 3 * head), jnp.float32) * 0.1

    # dep_conv init exactly as reset_parameters(): shift-identity kernel, 0 bias
    wd_np = np.zeros((C, K2, kernel_conv, kernel_conv), np.float32)
    for i in range(K2):
        wd_np[:, i, i // kernel_conv, i % kernel_conv] = 1.0
    wd = jnp.asarray(wd_np)
    bd = jnp.zeros((C,), jnp.float32)
    rate1 = jnp.float32(0.5)   # init_rate_half
    rate2 = jnp.float32(0.5)   # init_rate_half

    params = (w1, b1, w2, b2, w3, b3, wfc, wd, bd, rate1, rate2)

    ref = sssm_reference(x, params, head=head, kernel_conv=kernel_conv)

    # 1) per-tap accumulate variant, f32 MXU operands, two row-tiles (halo path)
    out = sssm_forward(x, params, head=head, kernel_conv=kernel_conv,
                       tile_h=8, matmul_dtype=jnp.float32, variant="pertap")
    jax.block_until_ready(out)
    np.testing.assert_allclose(np.asarray(out), np.asarray(ref),
                               rtol=1e-4, atol=1e-4)

    # 2) stacked single-matmul variant, f32 MXU operands, two row-tiles
    out2 = sssm_forward(x, params, head=head, kernel_conv=kernel_conv,
                        tile_h=8, matmul_dtype=jnp.float32, variant="stacked")
    jax.block_until_ready(out2)
    np.testing.assert_allclose(np.asarray(out2), np.asarray(ref),
                               rtol=1e-4, atol=1e-4)

    # 3) default path: bf16 MXU operands, f32 accumulation, exact f32 residual,
    #    auto tile (single row-tile; zero-halo / mask path)
    out3 = sssm_forward(x, params, head=head, kernel_conv=kernel_conv)
    jax.block_until_ready(out3)
    np.testing.assert_allclose(np.asarray(out3), np.asarray(ref),
                               rtol=5e-2, atol=5e-2)

    print("KERNEL_OK")
</pallas_src>

<mosaic_0001>
module attributes {stable_mosaic.version = 11 : i64} {
  func.func @_sssm_kernel(%arg0: i32, %arg1: i32, %arg2: memref<2xf32, #tpu.memory_space<smem>>, %arg3: memref<1x8x128xf32, #tpu.memory_space<vmem>>, %arg4: memref<1x8x128xf32, #tpu.memory_space<vmem>>, %arg5: memref<1x9x128xf32, #tpu.memory_space<vmem>>, %arg6: memref<24x8xf32, #tpu.memory_space<vmem>>, %arg7: memref<24x1xf32, #tpu.memory_space<vmem>>, %arg8: memref<9x8x24xf32, #tpu.memory_space<vmem>>, %arg9: memref<8x1xf32, #tpu.memory_space<vmem>>, %arg10: memref<1x8x128xf32, #tpu.memory_space<vmem>>) attributes {dimension_semantics = [#tpu.dimension_semantics<parallel>, #tpu.dimension_semantics<parallel>], iteration_bounds = array<i64: 2, 2>, scalar_prefetch = 0 : i64, scratch_operands = 0 : i64, tpu.core_type = #tpu.core_type<tc>, window_params = [{transform_indices = @transform_0, window_bounds = array<i64: 2>}, {transform_indices = @transform_1, window_bounds = array<i64: 1, 8, 128>}, {transform_indices = @transform_2, window_bounds = array<i64: 1, 8, 128>}, {transform_indices = @transform_3, window_bounds = array<i64: 1, 9, 128>}, {pipeline_mode = #tpu.pipeline_mode<synchronous>, transform_indices = @transform_4, window_bounds = array<i64: 24, 8>}, {pipeline_mode = #tpu.pipeline_mode<synchronous>, transform_indices = @transform_5, window_bounds = array<i64: 24, 1>}, {pipeline_mode = #tpu.pipeline_mode<synchronous>, transform_indices = @transform_6, window_bounds = array<i64: 9, 8, 24>}, {pipeline_mode = #tpu.pipeline_mode<synchronous>, transform_indices = @transform_7, window_bounds = array<i64: 8, 1>}, {transform_indices = @transform_8, window_bounds = array<i64: 1, 8, 128>}]} {
    %c0 = arith.constant 0 : index
    %c0_0 = arith.constant 0 : index
    %c0_1 = arith.constant 0 : index
    %0 = vector.load %arg3[%c0, %c0_0, %c0_1] : memref<1x8x128xf32, #tpu.memory_space<vmem>>, vector<1x8x128xf32>
    %1 = vector.shape_cast %0 : vector<1x8x128xf32> to vector<8x128xf32>
    %c0_2 = arith.constant 0 : index
    %c0_3 = arith.constant 0 : index
    %c0_4 = arith.constant 0 : index
    %2 = vector.load %arg4[%c0_2, %c0_3, %c0_4] : memref<1x8x128xf32, #tpu.memory_space<vmem>>, vector<1x8x128xf32>
    %3 = vector.shape_cast %2 : vector<1x8x128xf32> to vector<8x128xf32>
    %c0_5 = arith.constant 0 : index
    %c0_6 = arith.constant 0 : index
    %4 = vector.load %arg6[%c0_5, %c0_6] : memref<24x8xf32, #tpu.memory_space<vmem>>, vector<24x8xf32>
    %cst = arith.constant dense<0.000000e+00> : vector<24x128xf32>
    %5 = tpu.matmul %4, %1, %cst {dimension_numbers = #tpu.dot_dimension_numbers<[1], [0], [0], [1], [0, 0, 1, 1], [], []>} : vector<24x8xf32>, vector<8x128xf32>, vector<24x128xf32> -> vector<24x128xf32>
    %c0_7 = arith.constant 0 : index
    %c0_8 = arith.constant 0 : index
    %6 = vector.load %arg7[%c0_7, %c0_8] : memref<24x1xf32, #tpu.memory_space<vmem>>, vector<24x1xf32>
    %7 = vector.broadcast %6 : vector<24x1xf32> to vector<24x128xf32>
    %8 = arith.addf %5, %7 : vector<24x128xf32>
    %c0_9 = arith.constant 0 : index
    %c0_10 = arith.constant 0 : index
    %9 = vector.load %arg6[%c0_9, %c0_10] : memref<24x8xf32, #tpu.memory_space<vmem>>, vector<24x8xf32>
    %cst_11 = arith.constant dense<0.000000e+00> : vector<24x128xf32>
    %10 = tpu.matmul %9, %3, %cst_11 {dimension_numbers = #tpu.dot_dimension_numbers<[1], [0], [0], [1], [0, 0, 1, 1], [], []>} : vector<24x8xf32>, vector<8x128xf32>, vector<24x128xf32> -> vector<24x128xf32>
    %c0_12 = arith.constant 0 : index
    %c0_13 = arith.constant 0 : index
    %11 = vector.load %arg7[%c0_12, %c0_13] : memref<24x1xf32, #tpu.memory_space<vmem>>, vector<24x1xf32>
    %12 = vector.broadcast %11 : vector<24x1xf32> to vector<24x128xf32>
    %13 = arith.addf %10, %12 : vector<24x128xf32>
    %14 = vector.extract_strided_slice %13 {offsets = [0, 0], sizes = [24, 17], strides = [1, 1]} : vector<24x128xf32> to vector<24x17xf32>
    %15 = vector.extract_strided_slice %13 {offsets = [0, 17], sizes = [24, 17], strides = [1, 1]} : vector<24x128xf32> to vector<24x17xf32>
    %c0_14 = arith.constant 0 : index
    %c0_15 = arith.constant 0 : index
    %c0_16 = arith.constant 0 : index
    %16 = vector.load %arg5[%c0_14, %c0_15, %c0_16] : memref<1x9x128xf32, #tpu.memory_space<vmem>>, vector<1x9x128xf32>
    %17 = vector.shape_cast %16 : vector<1x9x128xf32> to vector<9x128xf32>
    %c0_17 = arith.constant 0 : index
    %c0_18 = arith.constant 0 : index
    %c0_19 = arith.constant 0 : index
    %18 = vector.load %arg8[%c0_17, %c0_18, %c0_19] : memref<9x8x24xf32, #tpu.memory_space<vmem>>, vector<1x8x24xf32>
    %19 = vector.shape_cast %18 : vector<1x8x24xf32> to vector<8x24xf32>
    %20 = vector.extract_strided_slice %8 {offsets = [0, 0], sizes = [24, 111], strides = [1, 1]} : vector<24x128xf32> to vector<24x111xf32>
    %21 = tpu.concatenate %14, %20 in 1 : vector<24x17xf32>, vector<24x111xf32> -> vector<24x128xf32>
    %cst_20 = arith.constant dense<0.000000e+00> : vector<8x128xf32>
    %22 = tpu.matmul %19, %21, %cst_20 {dimension_numbers = #tpu.dot_dimension_numbers<[1], [0], [0], [1], [0, 0, 1, 1], [], []>} : vector<8x24xf32>, vector<24x128xf32>, vector<8x128xf32> -> vector<8x128xf32>
    %23 = vector.extract_strided_slice %17 {offsets = [0, 0], sizes = [1, 128], strides = [1, 1]} : vector<9x128xf32> to vector<1x128xf32>
    %24 = vector.broadcast %23 : vector<1x128xf32> to vector<8x128xf32>
    %25 = arith.mulf %22, %24 : vector<8x128xf32>
    %c1 = arith.constant 1 : index
    %c0_21 = arith.constant 0 : index
    %c0_22 = arith.constant 0 : index
    %26 = vector.load %arg8[%c1, %c0_21, %c0_22] : memref<9x8x24xf32, #tpu.memory_space<vmem>>, vector<1x8x24xf32>
    %27 = vector.shape_cast %26 : vector<1x8x24xf32> to vector<8x24xf32>
    %28 = vector.extract_strided_slice %14 {offsets = [0, 1], sizes = [24, 16], strides = [1, 1]} : vector<24x17xf32> to vector<24x16xf32>
    %29 = vector.extract_strided_slice %8 {offsets = [0, 0], sizes = [24, 112], strides = [1, 1]} : vector<24x128xf32> to vector<24x112xf32>
    %30 = tpu.concatenate %28, %29 in 1 : vector<24x16xf32>, vector<24x112xf32> -> vector<24x128xf32>
    %cst_23 = arith.constant dense<0.000000e+00> : vector<8x128xf32>
    %31 = tpu.matmul %27, %30, %cst_23 {dimension_numbers = #tpu.dot_dimension_numbers<[1], [0], [0], [1], [0, 0, 1, 1], [], []>} : vector<8x24xf32>, vector<24x128xf32>, vector<8x128xf32> -> vector<8x128xf32>
    %32 = vector.extract_strided_slice %17 {offsets = [1, 0], sizes = [1, 128], strides = [1, 1]} : vector<9x128xf32> to vector<1x128xf32>
    %33 = vector.broadcast %32 : vector<1x128xf32> to vector<8x128xf32>
    %34 = arith.mulf %31, %33 : vector<8x128xf32>
    %35 = arith.addf %25, %34 : vector<8x128xf32>
    %c2 = arith.constant 2 : index
    %c0_24 = arith.constant 0 : index
    %c0_25 = arith.constant 0 : index
    %36 = vector.load %arg8[%c2, %c0_24, %c0_25] : memref<9x8x24xf32, #tpu.memory_space<vmem>>, vector<1x8x24xf32>
    %37 = vector.shape_cast %36 : vector<1x8x24xf32> to vector<8x24xf32>
    %38 = vector.extract_strided_slice %14 {offsets = [0, 2], sizes = [24, 15], strides = [1, 1]} : vector<24x17xf32> to vector<24x15xf32>
    %39 = vector.extract_strided_slice %8 {offsets = [0, 0], sizes = [24, 113], strides = [1, 1]} : vector<24x128xf32> to vector<24x113xf32>
    %40 = tpu.concatenate %38, %39 in 1 : vector<24x15xf32>, vector<24x113xf32> -> vector<24x128xf32>
    %cst_26 = arith.constant dense<0.000000e+00> : vector<8x128xf32>
    %41 = tpu.matmul %37, %40, %cst_26 {dimension_numbers = #tpu.dot_dimension_numbers<[1], [0], [0], [1], [0, 0, 1, 1], [], []>} : vector<8x24xf32>, vector<24x128xf32>, vector<8x128xf32> -> vector<8x128xf32>
    %42 = vector.extract_strided_slice %17 {offsets = [2, 0], sizes = [1, 128], strides = [1, 1]} : vector<9x128xf32> to vector<1x128xf32>
    %43 = vector.broadcast %42 : vector<1x128xf32> to vector<8x128xf32>
    %44 = arith.mulf %41, %43 : vector<8x128xf32>
    %45 = arith.addf %35, %44 : vector<8x128xf32>
    %c3 = arith.constant 3 : index
    %c0_27 = arith.constant 0 : index
    %c0_28 = arith.constant 0 : index
    %46 = vector.load %arg8[%c3, %c0_27, %c0_28] : memref<9x8x24xf32, #tpu.memory_space<vmem>>, vector<1x8x24xf32>
    %47 = vector.shape_cast %46 : vector<1x8x24xf32> to vector<8x24xf32>
    %48 = vector.extract_strided_slice %14 {offsets = [0, 16], sizes = [24, 1], strides = [1, 1]} : vector<24x17xf32> to vector<24x1xf32>
    %49 = vector.extract_strided_slice %8 {offsets = [0, 0], sizes = [24, 127], strides = [1, 1]} : vector<24x128xf32> to vector<24x127xf32>
    %50 = tpu.concatenate %48, %49 in 1 : vector<24x1xf32>, vector<24x127xf32> -> vector<24x128xf32>
    %cst_29 = arith.constant dense<0.000000e+00> : vector<8x128xf32>
    %51 = tpu.matmul %47, %50, %cst_29 {dimension_numbers = #tpu.dot_dimension_numbers<[1], [0], [0], [1], [0, 0, 1, 1], [], []>} : vector<8x24xf32>, vector<24x128xf32>, vector<8x128xf32> -> vector<8x128xf32>
    %52 = vector.extract_strided_slice %17 {offsets = [3, 0], sizes = [1, 128], strides = [1, 1]} : vector<9x128xf32> to vector<1x128xf32>
    %53 = vector.broadcast %52 : vector<1x128xf32> to vector<8x128xf32>
    %54 = arith.mulf %51, %53 : vector<8x128xf32>
    %55 = arith.addf %45, %54 : vector<8x128xf32>
    %c4 = arith.constant 4 : index
    %c0_30 = arith.constant 0 : index
    %c0_31 = arith.constant 0 : index
    %56 = vector.load %arg8[%c4, %c0_30, %c0_31] : memref<9x8x24xf32, #tpu.memory_space<vmem>>, vector<1x8x24xf32>
    %57 = vector.shape_cast %56 : vector<1x8x24xf32> to vector<8x24xf32>
    %cst_32 = arith.constant dense<0.000000e+00> : vector<8x128xf32>
    %58 = tpu.matmul %57, %8, %cst_32 {dimension_numbers = #tpu.dot_dimension_numbers<[1], [0], [0], [1], [0, 0, 1, 1], [], []>} : vector<8x24xf32>, vector<24x128xf32>, vector<8x128xf32> -> vector<8x128xf32>
    %59 = vector.extract_strided_slice %17 {offsets = [4, 0], sizes = [1, 128], strides = [1, 1]} : vector<9x128xf32> to vector<1x128xf32>
    %60 = vector.broadcast %59 : vector<1x128xf32> to vector<8x128xf32>
    %61 = arith.mulf %58, %60 : vector<8x128xf32>
    %62 = arith.addf %55, %61 : vector<8x128xf32>
    %c5 = arith.constant 5 : index
    %c0_33 = arith.constant 0 : index
    %c0_34 = arith.constant 0 : index
    %63 = vector.load %arg8[%c5, %c0_33, %c0_34] : memref<9x8x24xf32, #tpu.memory_space<vmem>>, vector<1x8x24xf32>
    %64 = vector.shape_cast %63 : vector<1x8x24xf32> to vector<8x24xf32>
    %65 = vector.extract_strided_slice %8 {offsets = [0, 1], sizes = [24, 127], strides = [1, 1]} : vector<24x128xf32> to vector<24x127xf32>
    %66 = vector.extract_strided_slice %15 {offsets = [0, 0], sizes = [24, 1], strides = [1, 1]} : vector<24x17xf32> to vector<24x1xf32>
    %67 = tpu.concatenate %65, %66 in 1 : vector<24x127xf32>, vector<24x1xf32> -> vector<24x128xf32>
    %cst_35 = arith.constant dense<0.000000e+00> : vector<8x128xf32>
    %68 = tpu.matmul %64, %67, %cst_35 {dimension_numbers = #tpu.dot_dimension_numbers<[1], [0], [0], [1], [0, 0, 1, 1], [], []>} : vector<8x24xf32>, vector<24x128xf32>, vector<8x128xf32> -> vector<8x128xf32>
    %69 = vector.extract_strided_slice %17 {offsets = [5, 0], sizes = [1, 128], strides = [1, 1]} : vector<9x128xf32> to vector<1x128xf32>
    %70 = vector.broadcast %69 : vector<1x128xf32> to vector<8x128xf32>
    %71 = arith.mulf %68, %70 : vector<8x128xf32>
    %72 = arith.addf %62, %71 : vector<8x128xf32>
    %c6 = arith.constant 6 : index
    %c0_36 = arith.constant 0 : index
    %c0_37 = arith.constant 0 : index
    %73 = vector.load %arg8[%c6, %c0_36, %c0_37] : memref<9x8x24xf32, #tpu.memory_space<vmem>>, vector<1x8x24xf32>
    %74 = vector.shape_cast %73 : vector<1x8x24xf32> to vector<8x24xf32>
    %75 = vector.extract_strided_slice %8 {offsets = [0, 15], sizes = [24, 113], strides = [1, 1]} : vector<24x128xf32> to vector<24x113xf32>
    %76 = vector.extract_strided_slice %15 {offsets = [0, 0], sizes = [24, 15], strides = [1, 1]} : vector<24x17xf32> to vector<24x15xf32>
    %77 = tpu.concatenate %75, %76 in 1 : vector<24x113xf32>, vector<24x15xf32> -> vector<24x128xf32>
    %cst_38 = arith.constant dense<0.000000e+00> : vector<8x128xf32>
    %78 = tpu.matmul %74, %77, %cst_38 {dimension_numbers = #tpu.dot_dimension_numbers<[1], [0], [0], [1], [0, 0, 1, 1], [], []>} : vector<8x24xf32>, vector<24x128xf32>, vector<8x128xf32> -> vector<8x128xf32>
    %79 = vector.extract_strided_slice %17 {offsets = [6, 0], sizes = [1, 128], strides = [1, 1]} : vector<9x128xf32> to vector<1x128xf32>
    %80 = vector.broadcast %79 : vector<1x128xf32> to vector<8x128xf32>
    %81 = arith.mulf %78, %80 : vector<8x128xf32>
    %82 = arith.addf %72, %81 : vector<8x128xf32>
    %c7 = arith.constant 7 : index
    %c0_39 = arith.constant 0 : index
    %c0_40 = arith.constant 0 : index
    %83 = vector.load %arg8[%c7, %c0_39, %c0_40] : memref<9x8x24xf32, #tpu.memory_space<vmem>>, vector<1x8x24xf32>
    %84 = vector.shape_cast %83 : vector<1x8x24xf32> to vector<8x24xf32>
    %85 = vector.extract_strided_slice %8 {offsets = [0, 16], sizes = [24, 112], strides = [1, 1]} : vector<24x128xf32> to vector<24x112xf32>
    %86 = vector.extract_strided_slice %15 {offsets = [0, 0], sizes = [24, 16], strides = [1, 1]} : vector<24x17xf32> to vector<24x16xf32>
    %87 = tpu.concatenate %85, %86 in 1 : vector<24x112xf32>, vector<24x16xf32> -> vector<24x128xf32>
    %cst_41 = arith.constant dense<0.000000e+00> : vector<8x128xf32>
    %88 = tpu.matmul %84, %87, %cst_41 {dimension_numbers = #tpu.dot_dimension_numbers<[1], [0], [0], [1], [0, 0, 1, 1], [], []>} : vector<8x24xf32>, vector<24x128xf32>, vector<8x128xf32> -> vector<8x128xf32>
    %89 = vector.extract_strided_slice %17 {offsets = [7, 0], sizes = [1, 128], strides = [1, 1]} : vector<9x128xf32> to vector<1x128xf32>
    %90 = vector.broadcast %89 : vector<1x128xf32> to vector<8x128xf32>
    %91 = arith.mulf %88, %90 : vector<8x128xf32>
    %92 = arith.addf %82, %91 : vector<8x128xf32>
    %c8 = arith.constant 8 : index
    %c0_42 = arith.constant 0 : index
    %c0_43 = arith.constant 0 : index
    %93 = vector.load %arg8[%c8, %c0_42, %c0_43] : memref<9x8x24xf32, #tpu.memory_space<vmem>>, vector<1x8x24xf32>
    %94 = vector.shape_cast %93 : vector<1x8x24xf32> to vector<8x24xf32>
    %95 = vector.extract_strided_slice %8 {offsets = [0, 17], sizes = [24, 111], strides = [1, 1]} : vector<24x128xf32> to vector<24x111xf32>
    %96 = tpu.concatenate %95, %15 in 1 : vector<24x111xf32>, vector<24x17xf32> -> vector<24x128xf32>
    %cst_44 = arith.constant dense<0.000000e+00> : vector<8x128xf32>
    %97 = tpu.matmul %94, %96, %cst_44 {dimension_numbers = #tpu.dot_dimension_numbers<[1], [0], [0], [1], [0, 0, 1, 1], [], []>} : vector<8x24xf32>, vector<24x128xf32>, vector<8x128xf32> -> vector<8x128xf32>
    %98 = vector.extract_strided_slice %17 {offsets = [8, 0], sizes = [1, 128], strides = [1, 1]} : vector<9x128xf32> to vector<1x128xf32>
    %99 = vector.broadcast %98 : vector<1x128xf32> to vector<8x128xf32>
    %100 = arith.mulf %97, %99 : vector<8x128xf32>
    %101 = arith.addf %92, %100 : vector<8x128xf32>
    %c0_45 = arith.constant 0 : index
    %c0_46 = arith.constant 0 : index
    %102 = vector.load %arg9[%c0_45, %c0_46] : memref<8x1xf32, #tpu.memory_space<vmem>>, vector<8x1xf32>
    %103 = vector.broadcast %102 : vector<8x1xf32> to vector<8x128xf32>
    %104 = arith.addf %101, %103 : vector<8x128xf32>
    %c0_47 = arith.constant 0 : index
    %105 = memref.load %arg2[%c0_47] : memref<2xf32, #tpu.memory_space<smem>>
    %106 = vector.broadcast %105 : f32 to vector<8x128xf32>
    %107 = arith.mulf %106, %1 : vector<8x128xf32>
    %c1_48 = arith.constant 1 : index
    %108 = memref.load %arg2[%c1_48] : memref<2xf32, #tpu.memory_space<smem>>
    %109 = vector.broadcast %108 : f32 to vector<8x128xf32>
    %110 = arith.mulf %109, %104 : vector<8x128xf32>
    %111 = arith.addf %107, %110 : vector<8x128xf32>
    %c0_49 = arith.constant 0 : index
    %c0_50 = arith.constant 0 : index
    %c0_51 = arith.constant 0 : index
    %112 = vector.load %arg10[%c0_49, %c0_50, %c0_51] : memref<1x8x128xf32, #tpu.memory_space<vmem>>, vector<1x8x128xf32>
    %113 = vector.shape_cast %112 : vector<1x8x128xf32> to vector<8x128xf32>
    %114 = vector.shape_cast %111 : vector<8x128xf32> to vector<1x8x128xf32>
    tpu.vector_store %arg10[%c0_49, %c0_50, %c0_51], %114 {strides = array<i32>} : memref<1x8x128xf32, #tpu.memory_space<vmem>>, vector<1x8x128xf32>,
    return
  }
  func.func @transform_0(%arg0: i32, %arg1: i32) -> i32 {
    %c0_i32 = arith.constant 0 : i32
    %c0_i32_0 = arith.constant 0 : i32
    return %c0_i32 : i32
  }
  func.func @transform_1(%arg0: i32, %arg1: i32) -> (i32, i32, i32) {
    %c0_i32 = arith.constant 0 : i32
    %c0_i32_0 = arith.constant 0 : i32
    return %arg1, %c0_i32, %arg0 : i32, i32, i32
  }
  func.func @transform_2(%arg0: i32, %arg1: i32) -> (i32, i32, i32) {
    %c2_i32 = arith.constant 2 : i32
    %0 = arith.muli %arg1, %c2_i32 : i32
    %1 = arith.addi %0, %arg0 : i32
    %c0_i32 = arith.constant 0 : i32
    %c0_i32_0 = arith.constant 0 : i32
    %c0_i32_1 = arith.constant 0 : i32
    return %1, %c0_i32, %c0_i32_0 : i32, i32, i32
  }
  func.func @transform_3(%arg0: i32, %arg1: i32) -> (i32, i32, i32) {
    %c0_i32 = arith.constant 0 : i32
    %c0_i32_0 = arith.constant 0 : i32
    %c0_i32_1 = arith.constant 0 : i32
    return %arg0, %c0_i32, %c0_i32_0 : i32, i32, i32
  }
  func.func @transform_4(%arg0: i32, %arg1: i32) -> (i32, i32) {
    %c0_i32 = arith.constant 0 : i32
    %c0_i32_0 = arith.constant 0 : i32
    %c0_i32_1 = arith.constant 0 : i32
    return %c0_i32, %c0_i32_0 : i32, i32
  }
  func.func @transform_5(%arg0: i32, %arg1: i32) -> (i32, i32) {
    %c0_i32 = arith.constant 0 : i32
    %c0_i32_0 = arith.constant 0 : i32
    %c0_i32_1 = arith.constant 0 : i32
    return %c0_i32, %c0_i32_0 : i32, i32
  }
  func.func @transform_6(%arg0: i32, %arg1: i32) -> (i32, i32, i32) {
    %c0_i32 = arith.constant 0 : i32
    %c0_i32_0 = arith.constant 0 : i32
    %c0_i32_1 = arith.constant 0 : i32
    %c0_i32_2 = arith.constant 0 : i32
    return %c0_i32, %c0_i32_0, %c0_i32_1 : i32, i32, i32
  }
  func.func @transform_7(%arg0: i32, %arg1: i32) -> (i32, i32) {
    %c0_i32 = arith.constant 0 : i32
    %c0_i32_0 = arith.constant 0 : i32
    %c0_i32_1 = arith.constant 0 : i32
    return %c0_i32, %c0_i32_0 : i32, i32
  }
  func.func @transform_8(%arg0: i32, %arg1: i32) -> (i32, i32, i32) {
    %c0_i32 = arith.constant 0 : i32
    %c0_i32_0 = arith.constant 0 : i32
    return %arg1, %c0_i32, %arg0 : i32, i32, i32
  }
}

module attributes {stable_mosaic.version = 11 : i64} {
  func.func @_sssm_kernel(%arg0: i32, %arg1: i32, %arg2: memref<2xf32, #tpu.memory_space<smem>>, %arg3: memref<1x8x128xf32, #tpu.memory_space<vmem>>, %arg4: memref<1x8x128xf32, #tpu.memory_space<vmem>>, %arg5: memref<1x9x128xf32, #tpu.memory_space<vmem>>, %arg6: memref<24x8xf32, #tpu.memory_space<vmem>>, %arg7: memref<24x1xf32, #tpu.memory_space<vmem>>, %arg8: memref<9x8x24xf32, #tpu.memory_space<vmem>>, %arg9: memref<8x1xf32, #tpu.memory_space<vmem>>, %arg10: memref<1x8x128xf32, #tpu.memory_space<vmem>>) attributes {dimension_semantics = [#tpu.dimension_semantics<parallel>, #tpu.dimension_semantics<parallel>], iteration_bounds = array<i64: 2, 2>, scalar_prefetch = 0 : i64, scratch_operands = 0 : i64, tpu.core_type = #tpu.core_type<tc>, window_params = [{transform_indices = @transform_0, window_bounds = array<i64: 2>}, {transform_indices = @transform_1, window_bounds = array<i64: 1, 8, 128>}, {transform_indices = @transform_2, window_bounds = array<i64: 1, 8, 128>}, {transform_indices = @transform_3, window_bounds = array<i64: 1, 9, 128>}, {pipeline_mode = #tpu.pipeline_mode<synchronous>, transform_indices = @transform_4, window_bounds = array<i64: 24, 8>}, {pipeline_mode = #tpu.pipeline_mode<synchronous>, transform_indices = @transform_5, window_bounds = array<i64: 24, 1>}, {pipeline_mode = #tpu.pipeline_mode<synchronous>, transform_indices = @transform_6, window_bounds = array<i64: 9, 8, 24>}, {pipeline_mode = #tpu.pipeline_mode<synchronous>, transform_indices = @transform_7, window_bounds = array<i64: 8, 1>}, {transform_indices = @transform_8, window_bounds = array<i64: 1, 8, 128>}]} {
    %c0 = arith.constant 0 : index
    %c0_0 = arith.constant 0 : index
    %c0_1 = arith.constant 0 : index
    %0 = vector.load %arg3[%c0, %c0_0, %c0_1] : memref<1x8x128xf32, #tpu.memory_space<vmem>>, vector<1x8x128xf32>
    %1 = vector.shape_cast %0 : vector<1x8x128xf32> to vector<8x128xf32>
    %c0_2 = arith.constant 0 : index
    %c0_3 = arith.constant 0 : index
    %c0_4 = arith.constant 0 : index
    %2 = vector.load %arg4[%c0_2, %c0_3, %c0_4] : memref<1x8x128xf32, #tpu.memory_space<vmem>>, vector<1x8x128xf32>
    %3 = vector.shape_cast %2 : vector<1x8x128xf32> to vector<8x128xf32>
    %c0_5 = arith.constant 0 : index
    %c0_6 = arith.constant 0 : index
    %4 = vector.load %arg6[%c0_5, %c0_6] : memref<24x8xf32, #tpu.memory_space<vmem>>, vector<24x8xf32>
    %cst = arith.constant dense<0.000000e+00> : vector<24x128xf32>
    %5 = tpu.matmul %4, %1, %cst {dimension_numbers = #tpu.dot_dimension_numbers<[1], [0], [0], [1], [0, 0, 1, 1], [], []>} : vector<24x8xf32>, vector<8x128xf32>, vector<24x128xf32> -> vector<24x128xf32>
    %c0_7 = arith.constant 0 : index
    %c0_8 = arith.constant 0 : index
    %6 = vector.load %arg7[%c0_7, %c0_8] : memref<24x1xf32, #tpu.memory_space<vmem>>, vector<24x1xf32>
    %7 = vector.broadcast %6 : vector<24x1xf32> to vector<24x128xf32>
    %8 = arith.addf %5, %7 : vector<24x128xf32>
    %c0_9 = arith.constant 0 : index
    %c0_10 = arith.constant 0 : index
    %9 = vector.load %arg6[%c0_9, %c0_10] : memref<24x8xf32, #tpu.memory_space<vmem>>, vector<24x8xf32>
    %cst_11 = arith.constant dense<0.000000e+00> : vector<24x128xf32>
    %10 = tpu.matmul %9, %3, %cst_11 {dimension_numbers = #tpu.dot_dimension_numbers<[1], [0], [0], [1], [0, 0, 1, 1], [], []>} : vector<24x8xf32>, vector<8x128xf32>, vector<24x128xf32> -> vector<24x128xf32>
    %c0_12 = arith.constant 0 : index
    %c0_13 = arith.constant 0 : index
    %11 = vector.load %arg7[%c0_12, %c0_13] : memref<24x1xf32, #tpu.memory_space<vmem>>, vector<24x1xf32>
    %12 = vector.broadcast %11 : vector<24x1xf32> to vector<24x128xf32>
    %13 = arith.addf %10, %12 : vector<24x128xf32>
    %14 = vector.extract_strided_slice %13 {offsets = [0, 0], sizes = [24, 17], strides = [1, 1]} : vector<24x128xf32> to vector<24x17xf32>
    %15 = vector.extract_strided_slice %13 {offsets = [0, 17], sizes = [24, 17], strides = [1, 1]} : vector<24x128xf32> to vector<24x17xf32>
    %c0_14 = arith.constant 0 : index
    %c0_15 = arith.constant 0 : index
    %c0_16 = arith.constant 0 : index
    %16 = vector.load %arg5[%c0_14, %c0_15, %c0_16] : memref<1x9x128xf32, #tpu.memory_space<vmem>>, vector<1x9x128xf32>
    %17 = vector.shape_cast %16 : vector<1x9x128xf32> to vector<9x128xf32>
    %c0_17 = arith.constant 0 : index
    %c0_18 = arith.constant 0 : index
    %c0_19 = arith.constant 0 : index
    %18 = vector.load %arg8[%c0_17, %c0_18, %c0_19] : memref<9x8x24xf32, #tpu.memory_space<vmem>>, vector<1x8x24xf32>
    %19 = vector.shape_cast %18 : vector<1x8x24xf32> to vector<8x24xf32>
    %20 = vector.extract_strided_slice %8 {offsets = [0, 0], sizes = [24, 111], strides = [1, 1]} : vector<24x128xf32> to vector<24x111xf32>
    %21 = tpu.concatenate %14, %20 in 1 : vector<24x17xf32>, vector<24x111xf32> -> vector<24x128xf32>
    %cst_20 = arith.constant dense<0.000000e+00> : vector<8x128xf32>
    %22 = tpu.matmul %19, %21, %cst_20 {dimension_numbers = #tpu.dot_dimension_numbers<[1], [0], [0], [1], [0, 0, 1, 1], [], []>} : vector<8x24xf32>, vector<24x128xf32>, vector<8x128xf32> -> vector<8x128xf32>
    %23 = vector.extract_strided_slice %17 {offsets = [0, 0], sizes = [1, 128], strides = [1, 1]} : vector<9x128xf32> to vector<1x128xf32>
    %24 = vector.broadcast %23 : vector<1x128xf32> to vector<8x128xf32>
    %25 = arith.mulf %22, %24 : vector<8x128xf32>
    %c1 = arith.constant 1 : index
    %c0_21 = arith.constant 0 : index
    %c0_22 = arith.constant 0 : index
    %26 = vector.load %arg8[%c1, %c0_21, %c0_22] : memref<9x8x24xf32, #tpu.memory_space<vmem>>, vector<1x8x24xf32>
    %27 = vector.shape_cast %26 : vector<1x8x24xf32> to vector<8x24xf32>
    %28 = vector.extract_strided_slice %14 {offsets = [0, 1], sizes = [24, 16], strides = [1, 1]} : vector<24x17xf32> to vector<24x16xf32>
    %29 = vector.extract_strided_slice %8 {offsets = [0, 0], sizes = [24, 112], strides = [1, 1]} : vector<24x128xf32> to vector<24x112xf32>
    %30 = tpu.concatenate %28, %29 in 1 : vector<24x16xf32>, vector<24x112xf32> -> vector<24x128xf32>
    %cst_23 = arith.constant dense<0.000000e+00> : vector<8x128xf32>
    %31 = tpu.matmul %27, %30, %cst_23 {dimension_numbers = #tpu.dot_dimension_numbers<[1], [0], [0], [1], [0, 0, 1, 1], [], []>} : vector<8x24xf32>, vector<24x128xf32>, vector<8x128xf32> -> vector<8x128xf32>
    %32 = vector.extract_strided_slice %17 {offsets = [1, 0], sizes = [1, 128], strides = [1, 1]} : vector<9x128xf32> to vector<1x128xf32>
    %33 = vector.broadcast %32 : vector<1x128xf32> to vector<8x128xf32>
    %34 = arith.mulf %31, %33 : vector<8x128xf32>
    %35 = arith.addf %25, %34 : vector<8x128xf32>
    %c2 = arith.constant 2 : index
    %c0_24 = arith.constant 0 : index
    %c0_25 = arith.constant 0 : index
    %36 = vector.load %arg8[%c2, %c0_24, %c0_25] : memref<9x8x24xf32, #tpu.memory_space<vmem>>, vector<1x8x24xf32>
    %37 = vector.shape_cast %36 : vector<1x8x24xf32> to vector<8x24xf32>
    %38 = vector.extract_strided_slice %14 {offsets = [0, 2], sizes = [24, 15], strides = [1, 1]} : vector<24x17xf32> to vector<24x15xf32>
    %39 = vector.extract_strided_slice %8 {offsets = [0, 0], sizes = [24, 113], strides = [1, 1]} : vector<24x128xf32> to vector<24x113xf32>
    %40 = tpu.concatenate %38, %39 in 1 : vector<24x15xf32>, vector<24x113xf32> -> vector<24x128xf32>
    %cst_26 = arith.constant dense<0.000000e+00> : vector<8x128xf32>
    %41 = tpu.matmul %37, %40, %cst_26 {dimension_numbers = #tpu.dot_dimension_numbers<[1], [0], [0], [1], [0, 0, 1, 1], [], []>} : vector<8x24xf32>, vector<24x128xf32>, vector<8x128xf32> -> vector<8x128xf32>
    %42 = vector.extract_strided_slice %17 {offsets = [2, 0], sizes = [1, 128], strides = [1, 1]} : vector<9x128xf32> to vector<1x128xf32>
    %43 = vector.broadcast %42 : vector<1x128xf32> to vector<8x128xf32>
    %44 = arith.mulf %41, %43 : vector<8x128xf32>
    %45 = arith.addf %35, %44 : vector<8x128xf32>
    %c3 = arith.constant 3 : index
    %c0_27 = arith.constant 0 : index
    %c0_28 = arith.constant 0 : index
    %46 = vector.load %arg8[%c3, %c0_27, %c0_28] : memref<9x8x24xf32, #tpu.memory_space<vmem>>, vector<1x8x24xf32>
    %47 = vector.shape_cast %46 : vector<1x8x24xf32> to vector<8x24xf32>
    %48 = vector.extract_strided_slice %14 {offsets = [0, 16], sizes = [24, 1], strides = [1, 1]} : vector<24x17xf32> to vector<24x1xf32>
    %49 = vector.extract_strided_slice %8 {offsets = [0, 0], sizes = [24, 127], strides = [1, 1]} : vector<24x128xf32> to vector<24x127xf32>
    %50 = tpu.concatenate %48, %49 in 1 : vector<24x1xf32>, vector<24x127xf32> -> vector<24x128xf32>
    %cst_29 = arith.constant dense<0.000000e+00> : vector<8x128xf32>
    %51 = tpu.matmul %47, %50, %cst_29 {dimension_numbers = #tpu.dot_dimension_numbers<[1], [0], [0], [1], [0, 0, 1, 1], [], []>} : vector<8x24xf32>, vector<24x128xf32>, vector<8x128xf32> -> vector<8x128xf32>
    %52 = vector.extract_strided_slice %17 {offsets = [3, 0], sizes = [1, 128], strides = [1, 1]} : vector<9x128xf32> to vector<1x128xf32>
    %53 = vector.broadcast %52 : vector<1x128xf32> to vector<8x128xf32>
    %54 = arith.mulf %51, %53 : vector<8x128xf32>
    %55 = arith.addf %45, %54 : vector<8x128xf32>
    %c4 = arith.constant 4 : index
    %c0_30 = arith.constant 0 : index
    %c0_31 = arith.constant 0 : index
    %56 = vector.load %arg8[%c4, %c0_30, %c0_31] : memref<9x8x24xf32, #tpu.memory_space<vmem>>, vector<1x8x24xf32>
    %57 = vector.shape_cast %56 : vector<1x8x24xf32> to vector<8x24xf32>
    %cst_32 = arith.constant dense<0.000000e+00> : vector<8x128xf32>
    %58 = tpu.matmul %57, %8, %cst_32 {dimension_numbers = #tpu.dot_dimension_numbers<[1], [0], [0], [1], [0, 0, 1, 1], [], []>} : vector<8x24xf32>, vector<24x128xf32>, vector<8x128xf32> -> vector<8x128xf32>
    %59 = vector.extract_strided_slice %17 {offsets = [4, 0], sizes = [1, 128], strides = [1, 1]} : vector<9x128xf32> to vector<1x128xf32>
    %60 = vector.broadcast %59 : vector<1x128xf32> to vector<8x128xf32>
    %61 = arith.mulf %58, %60 : vector<8x128xf32>
    %62 = arith.addf %55, %61 : vector<8x128xf32>
    %c5 = arith.constant 5 : index
    %c0_33 = arith.constant 0 : index
    %c0_34 = arith.constant 0 : index
    %63 = vector.load %arg8[%c5, %c0_33, %c0_34] : memref<9x8x24xf32, #tpu.memory_space<vmem>>, vector<1x8x24xf32>
    %64 = vector.shape_cast %63 : vector<1x8x24xf32> to vector<8x24xf32>
    %65 = vector.extract_strided_slice %8 {offsets = [0, 1], sizes = [24, 127], strides = [1, 1]} : vector<24x128xf32> to vector<24x127xf32>
    %66 = vector.extract_strided_slice %15 {offsets = [0, 0], sizes = [24, 1], strides = [1, 1]} : vector<24x17xf32> to vector<24x1xf32>
    %67 = tpu.concatenate %65, %66 in 1 : vector<24x127xf32>, vector<24x1xf32> -> vector<24x128xf32>
    %cst_35 = arith.constant dense<0.000000e+00> : vector<8x128xf32>
    %68 = tpu.matmul %64, %67, %cst_35 {dimension_numbers = #tpu.dot_dimension_numbers<[1], [0], [0], [1], [0, 0, 1, 1], [], []>} : vector<8x24xf32>, vector<24x128xf32>, vector<8x128xf32> -> vector<8x128xf32>
    %69 = vector.extract_strided_slice %17 {offsets = [5, 0], sizes = [1, 128], strides = [1, 1]} : vector<9x128xf32> to vector<1x128xf32>
    %70 = vector.broadcast %69 : vector<1x128xf32> to vector<8x128xf32>
    %71 = arith.mulf %68, %70 : vector<8x128xf32>
    %72 = arith.addf %62, %71 : vector<8x128xf32>
    %c6 = arith.constant 6 : index
    %c0_36 = arith.constant 0 : index
    %c0_37 = arith.constant 0 : index
    %73 = vector.load %arg8[%c6, %c0_36, %c0_37] : memref<9x8x24xf32, #tpu.memory_space<vmem>>, vector<1x8x24xf32>
    %74 = vector.shape_cast %73 : vector<1x8x24xf32> to vector<8x24xf32>
    %75 = vector.extract_strided_slice %8 {offsets = [0, 15], sizes = [24, 113], strides = [1, 1]} : vector<24x128xf32> to vector<24x113xf32>
    %76 = vector.extract_strided_slice %15 {offsets = [0, 0], sizes = [24, 15], strides = [1, 1]} : vector<24x17xf32> to vector<24x15xf32>
    %77 = tpu.concatenate %75, %76 in 1 : vector<24x113xf32>, vector<24x15xf32> -> vector<24x128xf32>
    %cst_38 = arith.constant dense<0.000000e+00> : vector<8x128xf32>
    %78 = tpu.matmul %74, %77, %cst_38 {dimension_numbers = #tpu.dot_dimension_numbers<[1], [0], [0], [1], [0, 0, 1, 1], [], []>} : vector<8x24xf32>, vector<24x128xf32>, vector<8x128xf32> -> vector<8x128xf32>
    %79 = vector.extract_strided_slice %17 {offsets = [6, 0], sizes = [1, 128], strides = [1, 1]} : vector<9x128xf32> to vector<1x128xf32>
    %80 = vector.broadcast %79 : vector<1x128xf32> to vector<8x128xf32>
    %81 = arith.mulf %78, %80 : vector<8x128xf32>
    %82 = arith.addf %72, %81 : vector<8x128xf32>
    %c7 = arith.constant 7 : index
    %c0_39 = arith.constant 0 : index
    %c0_40 = arith.constant 0 : index
    %83 = vector.load %arg8[%c7, %c0_39, %c0_40] : memref<9x8x24xf32, #tpu.memory_space<vmem>>, vector<1x8x24xf32>
    %84 = vector.shape_cast %83 : vector<1x8x24xf32> to vector<8x24xf32>
    %85 = vector.extract_strided_slice %8 {offsets = [0, 16], sizes = [24, 112], strides = [1, 1]} : vector<24x128xf32> to vector<24x112xf32>
    %86 = vector.extract_strided_slice %15 {offsets = [0, 0], sizes = [24, 16], strides = [1, 1]} : vector<24x17xf32> to vector<24x16xf32>
    %87 = tpu.concatenate %85, %86 in 1 : vector<24x112xf32>, vector<24x16xf32> -> vector<24x128xf32>
    %cst_41 = arith.constant dense<0.000000e+00> : vector<8x128xf32>
    %88 = tpu.matmul %84, %87, %cst_41 {dimension_numbers = #tpu.dot_dimension_numbers<[1], [0], [0], [1], [0, 0, 1, 1], [], []>} : vector<8x24xf32>, vector<24x128xf32>, vector<8x128xf32> -> vector<8x128xf32>
    %89 = vector.extract_strided_slice %17 {offsets = [7, 0], sizes = [1, 128], strides = [1, 1]} : vector<9x128xf32> to vector<1x128xf32>
    %90 = vector.broadcast %89 : vector<1x128xf32> to vector<8x128xf32>
    %91 = arith.mulf %88, %90 : vector<8x128xf32>
    %92 = arith.addf %82, %91 : vector<8x128xf32>
    %c8 = arith.constant 8 : index
    %c0_42 = arith.constant 0 : index
    %c0_43 = arith.constant 0 : index
    %93 = vector.load %arg8[%c8, %c0_42, %c0_43] : memref<9x8x24xf32, #tpu.memory_space<vmem>>, vector<1x8x24xf32>
    %94 = vector.shape_cast %93 : vector<1x8x24xf32> to vector<8x24xf32>
    %95 = vector.extract_strided_slice %8 {offsets = [0, 17], sizes = [24, 111], strides = [1, 1]} : vector<24x128xf32> to vector<24x111xf32>
    %96 = tpu.concatenate %95, %15 in 1 : vector<24x111xf32>, vector<24x17xf32> -> vector<24x128xf32>
    %cst_44 = arith.constant dense<0.000000e+00> : vector<8x128xf32>
    %97 = tpu.matmul %94, %96, %cst_44 {dimension_numbers = #tpu.dot_dimension_numbers<[1], [0], [0], [1], [0, 0, 1, 1], [], []>} : vector<8x24xf32>, vector<24x128xf32>, vector<8x128xf32> -> vector<8x128xf32>
    %98 = vector.extract_strided_slice %17 {offsets = [8, 0], sizes = [1, 128], strides = [1, 1]} : vector<9x128xf32> to vector<1x128xf32>
    %99 = vector.broadcast %98 : vector<1x128xf32> to vector<8x128xf32>
    %100 = arith.mulf %97, %99 : vector<8x128xf32>
    %101 = arith.addf %92, %100 : vector<8x128xf32>
    %c0_45 = arith.constant 0 : index
    %c0_46 = arith.constant 0 : index
    %102 = vector.load %arg9[%c0_45, %c0_46] : memref<8x1xf32, #tpu.memory_space<vmem>>, vector<8x1xf32>
    %103 = vector.broadcast %102 : vector<8x1xf32> to vector<8x128xf32>
    %104 = arith.addf %101, %103 : vector<8x128xf32>
    %c0_47 = arith.constant 0 : index
    %105 = memref.load %arg2[%c0_47] : memref<2xf32, #tpu.memory_space<smem>>
    %106 = vector.broadcast %105 : f32 to vector<8x128xf32>
    %107 = arith.mulf %106, %1 : vector<8x128xf32>
    %c1_48 = arith.constant 1 : index
    %108 = memref.load %arg2[%c1_48] : memref<2xf32, #tpu.memory_space<smem>>
    %109 = vector.broadcast %108 : f32 to vector<8x128xf32>
    %110 = arith.mulf %109, %104 : vector<8x128xf32>
    %111 = arith.addf %107, %110 : vector<8x128xf32>
    %c0_49 = arith.constant 0 : index
    %c0_50 = arith.constant 0 : index
    %c0_51 = arith.constant 0 : index
    %112 = vector.load %arg10[%c0_49, %c0_50, %c0_51] : memref<1x8x128xf32, #tpu.memory_space<vmem>>, vector<1x8x128xf32>
    %113 = vector.shape_cast %112 : vector<1x8x128xf32> to vector<8x128xf32>
    %114 = vector.shape_cast %111 : vector<8x128xf32> to vector<1x8x128xf32>
    tpu.vector_store %arg10[%c0_49, %c0_50, %c0_51], %114 {strides = array<i32>} : memref<1x8x128xf32, #tpu.memory_space<vmem>>, vector<1x8x128xf32>,
    return
  }
  func.func @transform_0(%arg0: i32, %arg1: i32) -> i32 {
    %c0_i32 = arith.constant 0 : i32
    %c0_i32_0 = arith.constant 0 : i32
    return %c0_i32 : i32
  }
  func.func @transform_1(%arg0: i32, %arg1: i32) -> (i32, i32, i32) {
    %c0_i32 = arith.constant 0 : i32
    %c0_i32_0 = arith.constant 0 : i32
    return %arg1, %c0_i32, %arg0 : i32, i32, i32
  }
  func.func @transform_2(%arg0: i32, %arg1: i32) -> (i32, i32, i32) {
    %c2_i32 = arith.constant 2 : i32
    %0 = arith.muli %arg1, %c2_i32 : i32
    %1 = arith.addi %0, %arg0 : i32
    %c0_i32 = arith.constant 0 : i32
    %c0_i32_0 = arith.constant 0 : i32
    %c0_i32_1 = arith.constant 0 : i32
    return %1, %c0_i32, %c0_i32_0 : i32, i32, i32
  }
  func.func @transform_3(%arg0: i32, %arg1: i32) -> (i32, i32, i32) {
    %c0_i32 = arith.constant 0 : i32
    %c0_i32_0 = arith.constant 0 : i32
    %c0_i32_1 = arith.constant 0 : i32
    return %arg0, %c0_i32, %c0_i32_0 : i32, i32, i32
  }
  func.func @transform_4(%arg0: i32, %arg1: i32) -> (i32, i32) {
    %c0_i32 = arith.constant 0 : i32
    %c0_i32_0 = arith.constant 0 : i32
    %c0_i32_1 = arith.constant 0 : i32
    return %c0_i32, %c0_i32_0 : i32, i32
  }
  func.func @transform_5(%arg0: i32, %arg1: i32) -> (i32, i32) {
    %c0_i32 = arith.constant 0 : i32
    %c0_i32_0 = arith.constant 0 : i32
    %c0_i32_1 = arith.constant 0 : i32
    return %c0_i32, %c0_i32_0 : i32, i32
  }
  func.func @transform_6(%arg0: i32, %arg1: i32) -> (i32, i32, i32) {
    %c0_i32 = arith.constant 0 : i32
    %c0_i32_0 = arith.constant 0 : i32
    %c0_i32_1 = arith.constant 0 : i32
    %c0_i32_2 = arith.constant 0 : i32
    return %c0_i32, %c0_i32_0, %c0_i32_1 : i32, i32, i32
  }
  func.func @transform_7(%arg0: i32, %arg1: i32) -> (i32, i32) {
    %c0_i32 = arith.constant 0 : i32
    %c0_i32_0 = arith.constant 0 : i32
    %c0_i32_1 = arith.constant 0 : i32
    return %c0_i32, %c0_i32_0 : i32, i32
  }
  func.func @transform_8(%arg0: i32, %arg1: i32) -> (i32, i32, i32) {
    %c0_i32 = arith.constant 0 : i32
    %c0_i32_0 = arith.constant 0 : i32
    return %arg1, %c0_i32, %arg0 : i32, i32, i32
  }
}

</mosaic_0001>

<bundles_post_ra>
// kernel: tpu_custom_call.1
= control target key start
LH: loop header
LB: loop body
LE: loop exit
PB: predicated region body
PF: predicated region fallthrough
CT: control target
= control target key end

     0   :  { %s2577_s0 = inlined_call_operand.vmem [shape: f32[2], index: 0, kind: input, shape index: {}]   ;;  %s2578_s1 = inlined_call_operand.vmem [shape: f32[2,8,256], index: 1, kind: input, shape index: {}]   ;;  %s2579_s2 = inlined_call_operand.vmem [shape: f32[4,8,128], index: 2, kind: input, shape index: {}]   ;;  %s2580_s3 = inlined_call_operand.vmem [shape: f32[2,9,128], index: 3, kind: input, shape index: {}]   ;;  %s2581_s4 = inlined_call_operand.vmem [shape: f32[24,8], index: 4, kind: input, shape index: {}]   ;;  %s2582_s5 = inlined_call_operand.vmem [shape: f32[24,1], index: 5, kind: input, shape index: {}]   ;;  %s2583_s6 = inlined_call_operand.vmem [shape: f32[9,8,24], index: 6, kind: input, shape index: {}]   ;;  %s2584_s7 = inlined_call_operand.vmem [shape: f32[8,1], index: 7, kind: input, shape index: {}]   ;;  %s2585_s8 = inlined_call_operand.hbm [shape: f32[2,8,256], index: 8, kind: output, shape index: {}]  }
   0x1   :  { %2589 = sst [smem:[#allocation11_spill]] %s2577_s0 }
   0x2   :  { %13 = vsyncpa [#allocation4], 0 }
   0x3   :  { %14 = vsyncpa [#allocation3], 0 }
   0x4   :  { %16 = vsyncpa [#allocation3 + $0x1], 0  ;;  %s2213_s27 = smov 0   ;;  %s2215_s28 = smov 0  }
   0x5   :  { %s2217_s29 = smov 0   ;;  %s2219_s30 = smov 0  }
   0x6   :  { %s2221_s9 = smov 0   ;;  %s2223_s10 = smov 0  }
   0x7   :  { %s2225_s11 = smov 0   ;;  %s2227_s12 = smov 0  }
   0x8 LB: > { %2590 = sst [smem:[#allocation8_spill]] %s2143_s11  ;;  %s1635_s13 = sadd.s32 4294967295, %s2147_s12   ;;  %s2147_s12 = sphi %s2227_s12, %s22_s12   ;;  %s2143_s11 = sphi %s2225_s11, %s2601_s11   ;;  %s2139_s10 = sphi %s2223_s10, %s2606_s10   ;;  %s2135_s9 = sphi %s2221_s9, %s2599_s9   ;;  %s2131_s30 = sphi %s2219_s30, %s2605_s30   ;;  %s2127_s29 = sphi %s2217_s29, %s2604_s29   ;;  %s2123_s28 = sphi %s2215_s28, %s2603_s28   ;;  %s2119_s27 = sphi %s2213_s27, %s2602_s27  }
   0x9   : > { %s1636_s14 = sadd.s32 4294967294, %s2147_s12   ;;  %s31_s15 = sadd.s32 1, %s2139_s10 }
   0xa   : > { %s34_s16 = sadd.s32 1, %s2143_s11  ;;  %p32_p0 = scmp.ge.s32.totalorder %s31_s15, 2 }
   0xb   : > { %s232_s17 = sadd.s32 1, %s2127_s29  ;;  %p242_p1 = scmp.ne.s32.totalorder %s2127_s29, %s2123_s28 }
   0xc   : > { %p243_p2 = scmp.eq.s32.totalorder %s1635_s13, 3  ;;  %s2608_s15 = smov (%p32_p0, %s31_s15), 0 }
   0xd   : > { %2591 = sst [smem:[#allocation9_spill]] %s2608_s15  ;;  %s2610_s16 = smov (!%p32_p0, %s34_s16), %s2143_s11 }
   0xe   : > { %s227_s18 = ssub.s32 %s2139_s10, %s2608_s15  ;;  %p2265_p3 = por %p243_p2, %p242_p1 }
   0xf   : > { %p36_p4 = scmp.ge.s32.totalorder %s2610_s16, 2  ;;  %p248_p5 = scmp.ne.s32.totalorder %s2123_s28, %s2119_s27 }
  0x10   : > { %p249_p6 = scmp.eq.s32.totalorder %s1636_s14, 3  ;;  %p1639_p7 = scmp.ge.s32.totalorder %s2147_s12, 1 }
  0x11   : > { %s2612_s16 = smov (%p36_p4, %s2610_s16), 0  ;;  %p256_p9 = scmp.lt.s32.totalorder %s2147_s12, 5 }
  0x12   : > { %2593 = sst [smem:[#allocation10_spill]] %s2612_s16  ;;  %p2274_p8 = por %p249_p6, %p248_p5 }
  0x13   : > { %s228_s21 = ssub.s32 %s2143_s11, %s2612_s16  ;;  %p2281_p10 = pnand %p1639_p7, %p256_p9 }
  0x14   : > { %s2594_s20 = scalar_select %p2274_p8, 1, 0 }
  0x15   : > { %s229_s22 = sor.u32 %s228_s21, %s227_s18  ;;  %p2285_p12 = scmp.eq.s32.totalorder %s1635_s13, 0 }
  0x16   : > { %p230_p11 = scmp.eq.s32.totalorder %s229_s22, 0  ;;  %p1864_p13 = pneg %p2281_p10 }
  0x17   : > { %s2597_s0 = sld [smem:[#allocation11_spill]] }
  0x18   : > { %s2295_s15 = scalar_select %p230_p11, %s2127_s29, %s232_s17  }
  0x19   : > { %p1865_p0 = pnand %p2285_p12, %p1864_p13 }
  0x1b   : > { %p2036_p2 = pneg %p1865_p0 }
  0x1d   : > { %s269_s14 = sshll.u32 %s2597_s0, 4  ;;  %s270_s14 = int_to_ptr.vmem [resolvable:$true] %s269_s14 }
  0x1e   : > { %s2034_s18 = scalar_lea.vmem %s270_s14, 16  ;;  %p2042_p6 = scmp.lt.s32.totalorder %s270_s14, %s270_s14 }
  0x1f   : > { %p2035_p1 = scmp.ne.s32.totalorder %s270_s14, %s2034_s18  ;;  %p2043_p7 = scmp.lt.s32.totalorder %s2034_s18, %s2034_s18 }
  0x21   : > { %p2037_p4 = pnand %p2036_p2, %p2035_p1  ;;  %p2044_p9 = por %p2043_p7, %p2042_p6 }
  0x23   : > { %p2038_p5 = pneg %p2037_p4 }
  0x25   : > { %p2045_p8 = pnand %p2044_p9, %p2038_p5 }
  0x27   : > { %2048 = shalt.err (!%p2045_p8)
}
  0x28   : > { %s2149_s13 = smov [#allocation2]   ;;  %324 = sbr.rel (%p2281_p10) target bundleno = 685 (0x2ad), region = 52 }
  0x29   : > { %1867 = dma.vmem_to_smem (!%p1865_p0), %s270_s14, 16, %s2149_s13, [#allocation4]  }
  0x2f   : > { %2110 = dma.done.wait (%p2285_p12), [#allocation4], 16  }
  0x30   : > { %2112 = vsyncadd (%p2285_p12), [#allocation4], 4294967280 }
  0x31   : > { %330 = sfence }
  0x32   : > { %p373_p11 = scmp.lt.s32.totalorder %s2131_s30, 1  ;;  %p375_p13 = scmp.lt.s32.totalorder %s2135_s9, 1  ;;  %v2150_v0 = vmov 0.0   ;;  %vm2151_vm0 = vmmov 0   ;;  %v399_v1 = vld [vmem:[%s2582_s5] sm:$0xff]  ;;  %v401_v2 = vld [vmem:[%s2582_s5 + $0x10] sm:$0xff] }
  0x33   : > { %1726 = vmatprep.subr.mxu0 %v2150_v0  ;;  %1856 = vmatprep.subr.mxu1 %v2150_v0  ;;  %s1647_s17 = sshll.u32 %s2131_s30, 1  ;;  %v2152_v3 = vmov 0   ;;  %v400_v4 = vld [vmem:[%s2582_s5 + $0x8] sm:$0xff]  ;;  %v396_v5 = vld [vmem:[%s2581_s4] sm:$0xff]  ;;  %vm417_vm1 = vcmask 64512   ;;  %v398_v6 = vld [vmem:[%s2581_s4 + $0x10] sm:$0xff] }
  0x34   : > { %s2614_s30 = smov (!%p373_p11, %s2131_s30), 1  ;;  %1728 = vmatprep.mubr.msk.f32.mxu0 %vm2151_vm0, %v2150_v0  ;;  %1734 = vmatprep.mubr.msk.f32.mxu1 %vm2151_vm0, %v2150_v0  ;;  %s2325_s14 = sadd.s32 %s2135_s9, %s1647_s17  ;;  %v397_v8 = vld [vmem:[%s2581_s4 + $0x8] sm:$0xff]  ;;  %v2153_v17 = vmov 0.0|0.0   ;;  %v1490_v35 = vld [vmem:[%s2584_s7] sm:$0xff]  ;;  %vm602_vm2 = vcmask 138240   ;;  %vm606_vm3 = vcmask 195584  }
  0x35   : > { %s2322_s25 = scalar_select %p375_p13, %s2135_s9, 1  ;;  %1957 = vset.pattern.permute.xlu0 %v2152_v3  ;;  %1958 = vset.pattern.permute.xlu1 %v2152_v3  ;;  %v589_v49 = vld [vmem:[%s2583_s6] sm:$0xff]  ;;  %vm708_vm4 = vcmask 130048   ;;  %vm811_vm5 = vcmask 121856   ;;  %vm914_vm6 = vcmask 7168   ;;  %vm1098_vm7 = vcmask 1039360  }
  0x36   : > { %s1645_s26 = sshll.u32 %s2614_s30, 1  ;;  %404 = vperm.xlu0 %1957, %v399_v1   ;;  %414 = vperm.xlu1 %1958, %v401_v2   ;;  %p383_p8 = scmp.lt.s32.totalorder %s2325_s14, 3  ;;  %vm1201_vm8 = vcmask 924672   ;;  %vm1304_vm9 = vcmask 916480   ;;  %vm1407_vm10 = vcmask 908288  }
  0x37   : > { %s378_s18 = sadd.s32 %s1645_s26, %s2322_s25  ;;  %s2154_s21 = smov 17  }
  0x38   : > { %s1646_s22 = sshll.u32 %s378_s18, 3  ;;  %s2156_s23 = smov 16  }
  0x39   : > { %s380_s0 = scalar_lea.vmem %s2578_s1, %s1646_s22  ;;  %s2155_s22 = smov 127  }
  0x3a   : > { %v2341_v7 = vld [vmem:[%s380_s0] sm:$0xff]  ;;  %s384_s17 = scalar_select %p383_p8, %s2325_s14, 3  ;;  %409 = vperm.xlu0 %1957, %v400_v4  }
  0x3b   : > { %1727 = vmatpush3.msra.mxu0 %v2341_v7  ;;  %1857 = vmatpush3.msra.mxu1 %v2341_v7  ;;  %s2157_s24 = smov 15   ;;  %s2158_s30 = smov 1  }
  0x3c   : > { %1729 = vmatmul.mubr.msk.f32.vlgmr.msra.gmra.mrb[0].mxu0 %vm417_vm1, %v396_v5  ;;  %1735 = vmatmul.mubr.msk.f32.vlgmr.msra.gmra.mrb[0].mxu1 %vm417_vm1, %v398_v6  ;;  %s1648_s26 = sshll.u32 %s384_s17, 3  ;;  %s2159_s9 = smov 113  }
  0x3d   : > { %1737 = vmatprep.subr.mxu1 %v2150_v0  ;;  %1731 = vmatprep.mubr.msk.f32.mxu0 %vm2151_vm0, %v2150_v0  ;;  %s386_s0 = scalar_lea.vmem %s2579_s2, %s1648_s26  ;;  %s2160_s17 = smov 112  }
  0x3e   : > { %v395_v9 = vld [vmem:[%s386_s0] sm:$0xff]  ;;  %1739 = vmatprep.mubr.msk.f32.mxu1 %vm2151_vm0, %v2150_v0  ;;  %1829 = vmatprep.subr.bf16.mxu0 %v2153_v17  ;;  %s2161_s26 = smov 126   ;;  %s2162_s11 = smov 110  }
  0x3f   : > { %1738 = vmatpush3.msra.mxu1 %v395_v9  ;;  %s2163_s16 = smov 96   ;;  %s2164_s0 = smov 95  }
  0x40   : > { %1732 = vmatmul.mubr.msk.f32.gmra.mrb[2].mxu0 %vm417_vm1, %v397_v8  ;;  %1740 = vmatmul.mubr.msk.f32.vlgmr.msra.gmra.mrb[2].mxu1 %vm417_vm1, %v396_v5  ;;  %s2165_s18 = smov 94   ;;  %s2166_s13 = smov 111  }
  0x41   : > { %1742 = vmatprep.mubr.msk.f32.mxu1 %vm2151_vm0, %v2150_v0  ;;  %1754 = vmatprep.mubr.msk.f32.mxu0 %vm2151_vm0, %v2150_v0 }
  0x42   : > { %1832 = vmatprep.subr.bf16.mxu1 %v2153_v17 }
  0x44   : > { %1743 = vmatmul.mubr.msk.f32.gmra.mrb[4].mxu1 %vm417_vm1, %v397_v8 }
  0x45   : > { %1745 = vmatprep.mubr.msk.f32.mxu1 %vm2151_vm0, %v2150_v0 }
  0x48   : > { %1746 = vmatmul.mubr.msk.f32.gmra.mrb[6].mxu1 %vm417_vm1, %v398_v6 }
  0x49   : > { %1763 = vmatprep.mubr.msk.f32.mxu1 %vm2151_vm0, %v2150_v0 }
  0xb5   : > { %v405_v10 = vpop.permute.xlu0 %404  ;;  %v415_v11 = vpop.permute.xlu1 %414 }
  0xb9   : > { %v410_v18 = vpop.permute.xlu0 %409 }
 0x10f   : > { %v493_v12 = vpop.f32.mrb[0].mxu0  ;;  %v503_v13 = vpop.f32.mrb[0].mxu1 }
 0x110   : > { %v2371_v14 = vadd.f32 %v503_v13, %v415_v11  ;;  %v1730_v15 = vpop.f32.mrb[1].mxu0  ;;  %v1736_v16 = vpop.f32.mrb[1].mxu1  ;;  %v2378_v21 = vadd.f32 %v493_v12, %v405_v10 }
 0x112   : > { %597 = vrot.lane.b32.xlu0 %v2371_v14, %s2154_s21  ;;  %1084 = vrot.lane.b32.xlu1 %v2371_v14, %s2155_s22 }
 0x113   : > { %v498_v19 = vpop.f32.mrb[2].mxu0  ;;  %v573_v20 = vpop.f32.mrb[2].mxu1 }
 0x114   : > { %v2380_v22 = vadd.f32 %v498_v19, %v410_v18  ;;  %v1733_v23 = vpop.f32.mrb[3].mxu0  ;;  %v1741_v24 = vpop.f32.mrb[3].mxu1  ;;  %v574_v32 = vadd.f32 %v573_v20, %v405_v10 }
 0x115   : > { %v1658_v23 = vld [vmem:[%s2583_s6 + $0x8] sm:$0xff] }
 0x116   : > { %703 = vrot.lane.b32.xlu0 %v2371_v14, %s2156_s23  ;;  %v1959_v25 = vpack.i.bf16 %v2380_v22, %v2378_v21  ;;  %v1842_v28 = vpack.c.bf16 %v2380_v22, %v2378_v21 }
 0x117   : > { %v578_v26 = vpop.f32.mrb[4].mxu1 }
 0x118   : > { %1960 = vrot.lane.b32.xlu1 %v1959_v25, %s2154_s21  ;;  %v1744_v27 = vpop.f32.mrb[5].mxu1  ;;  %v579_v31 = vadd.f32 %v578_v26, %v410_v18 }
 0x11a   : > { %806 = vrot.lane.b32.xlu0 %v2371_v14, %s2157_s24  ;;  %v1994_v33 = vpack.i.bf16 %v579_v31, %v574_v32 }
 0x11b   : > { %v583_v29 = vpop.f32.mrb[6].mxu1 }
 0x11c   : > { %1965 = vrot.lane.b32.xlu1 %v1959_v25, %s2156_s23  ;;  %v1747_v30 = vpop.f32.mrb[7].mxu1  ;;  %v584_v34 = vadd.f32 %v583_v29, %v415_v11 }
 0x11e   : > { %909 = vrot.lane.b32.xlu0 %v2371_v14, %s2158_s30 }
 0x120   : > { %1980 = vrot.lane.b32.xlu1 %v1959_v25, %s2155_s22 }
 0x122   : > { %1970 = vrot.lane.b32.xlu0 %v1959_v25, %s2157_s24 }
 0x124   : > { %1985 = vrot.lane.b32.xlu1 %v1959_v25, %s2159_s9 }
 0x126   : > { %1975 = vrot.lane.b32.xlu0 %v1959_v25, %s2158_s30 }
 0x128   : > { %1990 = vrot.lane.b32.xlu1 %v1959_v25, %s2160_s17 }
 0x12a   : > { %1995 = vrot.lane.b32.xlu0 %v1994_v33, %s2155_s22 }
 0x12c   : > { %2000 = vrot.lane.b32.xlu1 %v1994_v33, %s2161_s26 }
 0x12e   : > { %2010 = vrot.lane.b32.xlu0 %v1994_v33, %s2162_s11 }
 0x130   : > { %2005 = vrot.lane.b32.xlu1 %v1994_v33, %s2160_s17 }
 0x132   : > { %2015 = vrot.lane.b32.xlu0 %v1994_v33, %s2163_s16 }
 0x134   : > { %694 = vrot.lane.b32.xlu1 %v584_v34, %s2155_s22  ;;  %s1678_s22 = sshll.u32 %s2325_s14, 7  ;;  %s2167_s14 = smov [#allocation5]  }
 0x136   : > { %2020 = vrot.lane.b32.xlu0 %v1994_v33, %s2164_s0 }
 0x138   : > { %797 = vrot.lane.b32.xlu1 %v584_v34, %s2161_s26  ;;  %s1681_s26 = sshll.u32 %s2322_s25, 4  ;;  %s1497_s25 = sld [smem:[#allocation2]] }
 0x13a   : > { %2030 = vrot.lane.b32.xlu0 %v1994_v33, %s2165_s18 }
 0x13c   : > { %900 = vrot.lane.b32.xlu1 %v584_v34, %s2160_s17 }
 0x13e   : > { %1093 = vrot.lane.b32.xlu0 %v584_v34, %s2162_s11 }
 0x140   : > { %1187 = vrot.lane.b32.xlu1 %v2371_v14, %s2159_s9 }
 0x142   : > { %1196 = vrot.lane.b32.xlu0 %v584_v34, %s2163_s16  ;;  %s2053_s16 = sshll.u32 %s2167_s14, 4  ;;  %s2054_s16 = int_to_ptr.vmem [resolvable:$false] %s2053_s16 }
 0x144   : > { %2025 = vrot.lane.b32.xlu1 %v1959_v25, %s2166_s13 }
 0x146   : > { %1299 = vrot.lane.b32.xlu0 %v584_v34, %s2164_s0  ;;  %s2514_s0 = scalar_lea.vmem %s2580_s3, %s1681_s26 }
 0x148   : > { %1290 = vrot.lane.b32.xlu1 %v2371_v14, %s2160_s17  ;;  %s2524_s17 = scalar_lea.hbm %s2585_s8, %s1678_s22 }
 0x14a   : > { %1402 = vrot.lane.b32.xlu0 %v584_v34, %s2165_s18  ;;  %s1675_s18 = sld [smem:[#allocation2 + $0x1]] }
 0x14c   : > { %1393 = vrot.lane.b32.xlu1 %v2371_v14, %s2166_s13  ;;  %s370_s13 = sand.u32 1, %s2123_s28  }
 0x14d   : > { %s1644_s21 = sshll.u32 %s370_s13, 3  ;;  %s1506_s26 = scalar_lea.sflag [#allocation3], %s370_s13 }
 0x14e   : > { %s372_s23 = scalar_lea.vmem [#allocation5], %s1644_s21 }
 0x14f   : > { %s1521_s24 = sshll.u32 %s372_s23, 4  ;;  %s2526_s24 = int_to_ptr.vmem [resolvable:$true] %s1521_s24 }
 0x150   : > { %1493 = vperm.xlu1 %1958, %v1490_v35   ;;  %s2049_s11 = scalar_lea.vmem %s2526_s24, 128  ;;  %p2056_p1 = scmp.lt.s32.totalorder %s2526_s24, %s2054_s16 }
 0x151   : > { %p2050_p10 = scmp.ne.s32.totalorder %s2526_s24, %s2049_s11 }
 0x153   : > { %p2051_p12 = pnand %p2050_p10, %p2265_p3 }
 0x155   : > { %p2052_p0 = pneg %p2051_p12 }
 0x184   : > { %v598_v36 = vpop.permute.xlu0 %597  ;;  %v2398_v37 = vpop.permute.xlu1 %1084 }
 0x185   : > { %v605_v50 = vsel %vm602_vm2, %v584_v34, %v598_v36 }
 0x188   : > { %v704_v38 = vpop.permute.xlu0 %703 }
 0x18a   : > { %v1961_v39 = vpop.permute.xlu1 %1960 }
 0x18b   : > { %v1963_v40 = vunpack.i.h.bf16 %v1961_v39  ;;  %v1962_v41 = vunpack.i.l.bf16 %v1961_v39 }
 0x18c   : > { %v2400_v42 = vpop.permute.xlu0 %806 }
 0x18d   : > { %v604_v43 = vsel %vm602_vm2, %v579_v31, %v1963_v40  ;;  %v603_v44 = vsel %vm602_vm2, %v574_v32, %v1962_v41  ;;  %v1660_v32 = vld [vmem:[%s2583_s6 + $0x10] sm:$0xff] }
 0x18e   : > { %v1830_v45 = vpack.c.bf16 %v604_v43, %v603_v44  ;;  %v1966_v46 = vpop.permute.xlu1 %1965 }
 0x18f   : > { %v1968_v56 = vunpack.i.h.bf16 %v1966_v46  ;;  %v1967_v57 = vunpack.i.l.bf16 %v1966_v46 }
 0x190   : > { %v2402_v47 = vpop.permute.xlu0 %909  ;;  %1831 = vmatpush3.bf16.msra.mxu0 %v1830_v45 }
 0x191   : > { %1752 = vmatprep.subr.mxu0 %v2150_v0 }
 0x192   : > { %v2405_v48 = vpop.permute.xlu1 %1980 }
 0x193   : > { %v1983_v33 = vunpack.i.h.bf16 %v2405_v48  ;;  %v1982_v34 = vunpack.i.l.bf16 %v2405_v48 }
 0x194   : > { %v1971_v51 = vpop.permute.xlu0 %1970  ;;  %1753 = vmatpush3.msra.mxu0 %v605_v50 }
 0x195   : > { %1835 = vmatprep.subr.bf16.mxu0 %v2153_v17  ;;  %1755 = vmatmul.mubr.msk.f32.vlgmr.msra.gmra.mrb[4].mxu0 %vm606_vm3, %v589_v49  ;;  %v1973_v60 = vunpack.i.h.bf16 %v1971_v51  ;;  %v1972_v61 = vunpack.i.l.bf16 %v1971_v51 }
 0x196   : > { %v2412_v52 = vpop.permute.xlu1 %1985  ;;  %1772 = vmatprep.mubr.msk.f32.mxu0 %vm2151_vm0, %v2150_v0 }
 0x197   : > { %v1988_v40 = vunpack.i.h.bf16 %v2412_v52 }
 0x198   : > { %v1976_v53 = vpop.permute.xlu0 %1975 }
 0x199   : > { %v1978_v11 = vunpack.i.h.bf16 %v1976_v53  ;;  %v1977_v12 = vunpack.i.l.bf16 %v1976_v53 }
 0x19a   : > { %v2416_v54 = vpop.permute.xlu1 %1990 }
 0x19b   : > { %v1993_v51 = vunpack.i.h.bf16 %v2416_v54 }
 0x19c   : > { %v1996_v55 = vpop.permute.xlu0 %1995 }
 0x19d   : > { %v1998_v58 = vunpack.i.h.bf16 %v1996_v55  ;;  %v1997_v59 = vunpack.i.l.bf16 %v1996_v55 }
 0x19e   : > { %v2001_v62 = vpop.permute.xlu1 %2000 }
 0x19f   : > { %v709_v63 = vsel %vm708_vm4, %v1997_v59, %v1967_v57  ;;  %v710_v1 = vsel %vm708_vm4, %v1998_v58, %v1968_v56  ;;  %v2003_v2 = vunpack.i.h.bf16 %v2001_v62  ;;  %v2002_v3 = vunpack.i.l.bf16 %v2001_v62 }
 0x1a0   : > { %v1833_v4 = vpack.c.bf16 %v710_v1, %v709_v63  ;;  %v2011_v5 = vpop.permute.xlu0 %2010 }
 0x1a1   : > { %v813_v6 = vsel %vm811_vm5, %v2003_v2, %v1973_v60  ;;  %v812_v8 = vsel %vm811_vm5, %v2002_v3, %v1972_v61  ;;  %v2013_v27 = vunpack.i.h.bf16 %v2011_v5  ;;  %v2012_v29 = vunpack.i.l.bf16 %v2011_v5  ;;  %v1668_v61 = vld [vmem:[%s2583_s6 + $0x30] sm:$0xff] }
 0x1a2   : > { %v1836_v9 = vpack.c.bf16 %v813_v6, %v812_v8  ;;  %v2006_v10 = vpop.permute.xlu1 %2005  ;;  %1834 = vmatpush3.bf16.msra.mxu1 %v1833_v4  ;;  %v1670_v8 = vld [vmem:[%s2583_s6 + $0x38] sm:$0xff] }
 0x1a3   : > { %v2008_v13 = vunpack.i.h.bf16 %v2006_v10  ;;  %v2007_v15 = vunpack.i.l.bf16 %v2006_v10  ;;  %1761 = vmatprep.subr.mxu1 %v2150_v0  ;;  %v1099_v41 = vsel %vm1098_vm7, %v1982_v34, %v2012_v29  ;;  %v1100_v43 = vsel %vm1098_vm7, %v1983_v33, %v2013_v27 }
 0x1a4   : > { %v2016_v16 = vpop.permute.xlu0 %2015  ;;  %1837 = vmatpush3.bf16.msra.mxu0 %v1836_v9  ;;  %v1845_v22 = vpack.c.bf16 %v1100_v43, %v1099_v41 }
 0x1a5   : > { %v916_v18 = vsel %vm914_vm6, %v2008_v13, %v1978_v11  ;;  %v915_v19 = vsel %vm914_vm6, %v2007_v15, %v1977_v12  ;;  %1770 = vmatprep.subr.mxu0 %v2150_v0  ;;  %v2017_v30 = vunpack.i.l.bf16 %v2016_v16  ;;  %v2018_v35 = vunpack.i.h.bf16 %v2016_v16  ;;  %v1672_v11 = vld [vmem:[%s2583_s6 + $0x40] sm:$0xff] }
 0x1a6   : > { %v695_v20 = vpop.permute.xlu1 %694  ;;  %v1839_v25 = vpack.c.bf16 %v916_v18, %v915_v19  ;;  %v680_v16 = vlaneseq  ;;  %v587_v19 = vld [vmem:[%s2514_s0] sm:$0xff] }
 0x1a7   : > { %v711_v24 = vsel %vm708_vm4, %v695_v20, %v704_v38  ;;  %v1987_v38 = vunpack.i.l.bf16 %v2412_v52  ;;  %v1203_v50 = vsel %vm1201_vm8, %v1988_v40, %v2018_v35  ;;  %v1992_v52 = vunpack.i.l.bf16 %v2416_v54  ;;  %v1666_v54 = vld [vmem:[%s2583_s6 + $0x28] sm:$0xff] }
 0x1a8   : > { %v2021_v26 = vpop.permute.xlu0 %2020  ;;  %1762 = vmatpush3.msra.mxu1 %v711_v24  ;;  %v681_v18 = vshrl.u32 %v680_v16, 7 }
 0x1a9   : > { %1838 = vmatprep.subr.bf16.mxu1 %v2153_v17  ;;  %1764 = vmatmul.mubr.msk.f32.vlgmr.msra.gmra.mrb[8].mxu1 %vm606_vm3, %v1658_v23  ;;  %v1202_v45 = vsel %vm1201_vm8, %v1987_v38, %v2017_v30  ;;  %v2023_v46 = vunpack.i.h.bf16 %v2021_v26  ;;  %v2022_v48 = vunpack.i.l.bf16 %v2021_v26 }
 0x1aa   : > { %v798_v31 = vpop.permute.xlu1 %797  ;;  %1840 = vmatpush3.bf16.msra.mxu1 %v1839_v25  ;;  %1781 = vmatprep.mubr.msk.f32.mxu1 %vm2151_vm0, %v2150_v0  ;;  %v1848_v53 = vpack.c.bf16 %v1203_v50, %v1202_v45  ;;  %v787_v20 = vsub.s32 1, %v681_v18  ;;  %v890_v25 = vsub.s32 2, %v681_v18  ;;  %v1074_v34 = vsub.s32 4, %v681_v18 }
 0x1ab   : > { %v814_v36 = vsel %vm811_vm5, %v798_v31, %v2400_v42  ;;  %1779 = vmatprep.subr.mxu1 %v2150_v0  ;;  %v1662_v42 = vld [vmem:[%s2583_s6 + $0x18] sm:$0xff]  ;;  %v1305_v55 = vsel %vm1304_vm9, %v1992_v52, %v2022_v48  ;;  %v1306_v56 = vsel %vm1304_vm9, %v1993_v51, %v2023_v46  ;;  %v1177_v43 = vsub.s32 5, %v681_v18 }
 0x1ac   : > { %v2031_v39 = vpop.permute.xlu0 %2030  ;;  %1771 = vmatpush3.msra.mxu0 %v814_v36  ;;  %v1851_v58 = vpack.c.bf16 %v1306_v56, %v1305_v55  ;;  %v788_v24 = vrot.slane %v587_v19, %v787_v20  ;;  %v891_v30 = vrot.slane %v587_v19, %v890_v25  ;;  %v1075_v41 = vrot.slane %v587_v19, %v1074_v34 }
 0x1ad   : > { %1773 = vmatmul.mubr.msk.f32.vlgmr.msra.gmra.mrb[6].mxu0 %vm606_vm3, %v1660_v32  ;;  %1841 = vmatprep.subr.bf16.mxu0 %v2153_v17  ;;  %v2033_v59 = vunpack.i.h.bf16 %v2031_v39  ;;  %v2032_v62 = vunpack.i.l.bf16 %v2031_v39  ;;  %v993_v32 = vsub.s32 3, %v681_v18  ;;  %v1280_v46 = vsub.s32 6, %v681_v18 }
 0x1ae   : > { %v901_v44 = vpop.permute.xlu1 %900  ;;  %1843 = vmatpush3.bf16.msra.mxu0 %v1842_v28  ;;  %1790 = vmatprep.mubr.msk.f32.mxu0 %vm2151_vm0, %v2150_v0  ;;  %v1664_v28 = vld [vmem:[%s2583_s6 + $0x20] sm:$0xff]  ;;  %v1383_v52 = vsub.s32 7, %v681_v18 }
 0x1af   : > { %v917_v49 = vsel %vm914_vm6, %v901_v44, %v2402_v47  ;;  %1788 = vmatprep.subr.mxu0 %v2150_v0  ;;  %v994_v39 = vrot.slane %v587_v19, %v993_v32  ;;  %v1281_v51 = vrot.slane %v587_v19, %v1280_v46 }
 0x1b0   : > { %v1094_v21 = vpop.permute.xlu0 %1093  ;;  %1780 = vmatpush3.msra.mxu1 %v917_v49 }
 0x1b1   : > { %1782 = vmatmul.mubr.msk.f32.vlgmr.msra.gmra.mrb[10].mxu1 %vm606_vm3, %v1662_v42  ;;  %1844 = vmatprep.subr.bf16.mxu1 %v2153_v17 }
 0x1b2   : > { %v1188_v47 = vpop.permute.xlu1 %1187  ;;  %1789 = vmatpush3.msra.mxu0 %v2371_v14  ;;  %1846 = vmatpush3.bf16.msra.mxu1 %v1845_v22  ;;  %v1101_v14 = vsel %vm1098_vm7, %v2398_v37, %v1094_v21  ;;  %v1178_v22 = vrot.slane %v587_v19, %v1177_v43 }
 0x1b3   : > { %1791 = vmatmul.mubr.msk.f32.vlgmr.msra.gmra.mrb[8].mxu0 %vm606_vm3, %v1664_v28  ;;  %1847 = vmatprep.subr.bf16.mxu0 %v2153_v17 }
 0x1b4   : > { %v1197_v57 = vpop.permute.xlu0 %1196  ;;  %1849 = vmatpush3.bf16.msra.mxu0 %v1848_v53  ;;  %1797 = vmatprep.subr.mxu1 %v2150_v0 }
 0x1b5   : > { %1799 = vmatprep.mubr.msk.f32.mxu1 %vm2151_vm0, %v2150_v0  ;;  %1806 = vmatprep.subr.mxu0 %v2150_v0  ;;  %v1204_v37 = vsel %vm1201_vm8, %v1188_v47, %v1197_v57 }
 0x1b6   : > { %v2026_v60 = vpop.permute.xlu1 %2025  ;;  %1798 = vmatpush3.msra.mxu1 %v1101_v14  ;;  %1808 = vmatprep.mubr.msk.f32.mxu0 %vm2151_vm0, %v2150_v0 }
 0x1b7   : > { %v2028_v63 = vunpack.i.h.bf16 %v2026_v60  ;;  %v2027_v1 = vunpack.i.l.bf16 %v2026_v60  ;;  %1800 = vmatmul.mubr.msk.f32.vlgmr.msra.gmra.mrb[12].mxu1 %vm606_vm3, %v1666_v54  ;;  %1850 = vmatprep.subr.bf16.mxu1 %v2153_v17 }
 0x1b8   : > { %v1300_v2 = vpop.permute.xlu0 %1299  ;;  %1807 = vmatpush3.msra.mxu0 %v1204_v37  ;;  %1852 = vmatpush3.bf16.msra.mxu1 %v1851_v58  ;;  %v1384_v58 = vrot.slane %v587_v19, %v1383_v52  ;;  %v1674_v37 = vld [vmem:[%s2514_s0 + $0x8] ss:$0 sm:$0xff]  ;;  %s2055_s0 = scalar_lea.vmem %s2054_s16, 256 }
 0x1b9   : > { %v1409_v3 = vsel %vm1407_vm10, %v2028_v63, %v2033_v59  ;;  %v1408_v4 = vsel %vm1407_vm10, %v2027_v1, %v2032_v62  ;;  %1809 = vmatmul.mubr.msk.f32.vlgmr.msra.gmra.mrb[10].mxu0 %vm606_vm3, %v1668_v61  ;;  %1815 = vmatprep.subr.mxu1 %v2150_v0  ;;  %p2057_p2 = scmp.lt.s32.totalorder %s2055_s0, %s2049_s11 }
 0x1ba   : > { %v1854_v5 = vpack.c.bf16 %v1409_v3, %v1408_v4  ;;  %v1291_v6 = vpop.permute.xlu1 %1290  ;;  %1853 = vmatprep.subr.bf16.mxu0 %v2153_v17  ;;  %1817 = vmatprep.mubr.msk.f32.mxu1 %vm2151_vm0, %v2150_v0  ;;  %v1498_v4 = vstv %s1497_s25 }
 0x1bb   : > { %v1307_v9 = vsel %vm1304_vm9, %v1291_v6, %v1300_v2  ;;  %1826 = vmatprep.mubr.msk.f32.mxu0 %vm2151_vm0, %v2150_v0  ;;  %p2058_p4 = por %p2057_p2, %p2056_p1 }
 0x1bc   : > { %1816 = vmatpush3.msra.mxu1 %v1307_v9  ;;  %1855 = vmatpush3.bf16.msra.mxu0 %v1854_v5  ;;  %v1403_v17 = vpop.permute.xlu0 %1402  ;;  %v1499_v9 = vmul.f32 %v1498_v4, %v2341_v7 }
 0x1bd   : > { %1818 = vmatmul.mubr.msk.f32.vlgmr.msra.gmra.mrb[14].mxu1 %vm606_vm3, %v1670_v8  ;;  %1824 = vmatprep.subr.mxu0 %v2150_v0  ;;  %v682_v0 = vsub.s32 0, %v681_v18  ;;  %v1501_v8 = vstv %s1675_s18  ;;  %p2059_p5 = pnand %p2058_p4, %p2052_p0 }
 0x1be   : > { %v1394_v10 = vpop.permute.xlu1 %1393 }
 0x1bf   : > { %v1410_v12 = vsel %vm1407_vm10, %v1394_v10, %v1403_v17  ;;  %v683_v23 = vrot.slane %v587_v19, %v682_v0 }
 0x1c0   : > { %1825 = vmatpush3.msra.mxu0 %v1410_v12 }
 0x1c1   : > { %1827 = vmatmul.mubr.msk.f32.vlgmr.msra.gmra.mrb[12].mxu0 %vm606_vm3, %v1672_v11 }
 0x1cf   : > { %v1494_v6 = vpop.permute.xlu1 %1493 }
 0x268   : > { %v676_v13 = vpop.f32.mrb[4].mxu0 }
 0x269   : > { %v1756_v15 = vpop.f32.mrb[5].mxu0  ;;  %v684_v26 = vmul.f32 %v683_v23, %v676_v13 }
 0x27c   : > { %v781_v27 = vpop.f32.mrb[8].mxu1 }
 0x27d   : > { %v789_v29 = vmul.f32 %v788_v24, %v781_v27  ;;  %v1765_v31 = vpop.f32.mrb[9].mxu1 }
 0x27f   : > { %v790_v33 = vadd.f32 %v789_v29, %v684_v26 }
 0x280   : > { %v884_v35 = vpop.f32.mrb[6].mxu0 }
 0x281   : > { %v892_v36 = vmul.f32 %v891_v30, %v884_v35  ;;  %v1774_v38 = vpop.f32.mrb[7].mxu0 }
 0x283   : > { %v893_v40 = vadd.f32 %v892_v36, %v790_v33 }
 0x284   : > { %v987_v44 = vpop.f32.mrb[10].mxu1 }
 0x285   : > { %v995_v42 = vmul.f32 %v994_v39, %v987_v44  ;;  %v1783_v45 = vpop.f32.mrb[11].mxu1 }
 0x286   : > { %v1068_v48 = vpop.f32.mrb[8].mxu0 }
 0x287   : > { %v996_v49 = vadd.f32 %v995_v42, %v893_v40  ;;  %v1076_v50 = vmul.f32 %v1075_v41, %v1068_v48  ;;  %v1792_v21 = vpop.f32.mrb[9].mxu0 }
 0x289   : > { %v1077_v28 = vadd.f32 %v1076_v50, %v996_v49 }
 0x28a   : > { %v1171_v47 = vpop.f32.mrb[12].mxu1 }
 0x28b   : > { %v1179_v53 = vmul.f32 %v1178_v22, %v1171_v47  ;;  %v1801_v55 = vpop.f32.mrb[13].mxu1 }
 0x28c   : > { %v1274_v56 = vpop.f32.mrb[10].mxu0 }
 0x28d   : > { %v1180_v57 = vadd.f32 %v1179_v53, %v1077_v28  ;;  %v1282_v54 = vmul.f32 %v1281_v51, %v1274_v56  ;;  %v1810_v14 = vpop.f32.mrb[11].mxu0 }
 0x28f   : > { %v1283_v59 = vadd.f32 %v1282_v54, %v1180_v57 }
 0x290   : > { %v1377_v60 = vpop.f32.mrb[14].mxu1 }
 0x291   : > { %v1385_v61 = vmul.f32 %v1384_v58, %v1377_v60  ;;  %v1819_v62 = vpop.f32.mrb[15].mxu1 }
 0x293   : > { %v1386_v63 = vadd.f32 %v1385_v61, %v1283_v59 }
 0x294   : > { %v1480_v1 = vpop.f32.mrb[12].mxu0 }
 0x295   : > { %v1488_v2 = vmul.f32 %v1674_v37, %v1480_v1  ;;  %v1828_v3 = vpop.f32.mrb[13].mxu0 }
 0x297   : > { %v1489_v5 = vadd.f32 %v1488_v2, %v1386_v63 }
 0x299   : > { %v1496_v17 = vadd.f32 %v1494_v6, %v1489_v5 }
 0x29b   : > { %v1502_v10 = vmul.f32 %v1501_v8, %v1496_v17 }
 0x29d   : > { %v1503_v11 = vadd.f32 %v1502_v10, %v1499_v9 }
 0x29f   : > { %1504 = vst [vmem:[%s372_s23] sm:$0xff] %v1503_v11 }
 0x2a0   : > { %2062 = shalt.err (!%p2059_p5)
}
 0x2a1   : > { %s2063_s25 = scalar_lea.hbm %s2524_s17, 128  ;;  %s2067_s21 = scalar_lea.hbm %s2585_s8, 512 }
 0x2a2   : > { %p2064_p6 = scmp.ne.s32.totalorder %s2524_s17, %s2063_s25  ;;  %p2068_p11 = scmp.lt.u32.totalorder %s2524_s17, %s2585_s8 }
 0x2a3   : > { %p2069_p13 = scmp.lt.u32.totalorder %s2067_s21, %s2063_s25  ;;  %p2071_p10 = scmp.lt.u32.totalorder %s2063_s25, %s2524_s17 }
 0x2a4   : > { %p2065_p7 = pnand %p2064_p6, %p2265_p3 }
 0x2a5   : > { %p2070_p8 = por %p2069_p13, %p2068_p11 }
 0x2a6   : > { %p2066_p9 = pneg %p2065_p7 }
 0x2a7   : > { %p2072_p12 = por %p2071_p10, %p2070_p8 }
 0x2a9   : > { %p2073_p0 = pnand %p2072_p12, %p2066_p9 }
 0x2ab   : > { %2076 = shalt.err (!%p2073_p0)
}
 0x2ac   : > { %1862 = dma.vmem_to_hbm [thread:$0]  (%p2265_p3), %s2526_s24, 128, %s2524_s17, %s1506_s26  }
 0x2ad PF: > { %p1874_p1 = scmp.ge.s32.totalorder %s2147_s12, 2  ;;  %s1533_s30 = sand.u32 1, %s2119_s27  }
 0x2ae   : > { %p2598_p2 = scmp.ne.s32.totalorder %s2594_s20, 0  ;;  %s1534_s9 = scalar_lea.sflag [#allocation3], %s1533_s30 }
 0x2b0   : > { %p1869_p4 = pnand %p1874_p1, %p2598_p2 }
 0x2b2   : > { %2114 = dma.done.wait (!%p1869_p4), %s1534_s9, 128  }
 0x2b3   : > { %2116 = vsyncadd (!%p1869_p4), %s1534_s9, 4294967168  ;;  %s22_s12 = sadd.s32 1, %s2147_s12   ;;  %s2599_s9 = sld [smem:[#allocation8_spill]] }
 0x2b4   : > { %p19_p5 = scmp.ge.s32.totalorder %s22_s12, 6   ;;  %s2600_s19 = sld [smem:[#allocation9_spill]] }
 0x2b5   : > { %s2601_s11 = sld [smem:[#allocation10_spill]]  ;;  %s2602_s27 = smov %s2123_s28 }
 0x2b6   : > { %s2603_s28 = smov %s2127_s29  ;;  %s2604_s29 = smov %s2295_s15 }
 0x2b7   : > { %s2605_s30 = smov %s2139_s10  ;;  %21 = sbr.rel (!%p19_p5) target bundleno = 8 (0x8), region = 106 }
 0x2ba   : > { %s2606_s10 = smov %s2600_s19 }
 0x2be   :  { %1539 = vsyncpa [#allocation3], 1 }
 0x2bf   :  { %1541 = vsyncpa [#allocation3 + $0x1], 1 }
 0x2c0   :  { %1542 = vsyncpa [#allocation4], 1 }
 0x2c1   :  { %1544 = vsyncpa [#allocation4 + $0x1], 1 }

// kernel: tpu_custom_call.1
= control target key start
LH: loop header
LB: loop body
LE: loop exit
PB: predicated region body
PF: predicated region fallthrough
CT: control target
= control target key end

     0   :  { %s2577_s0 = inlined_call_operand.vmem [shape: f32[2], index: 0, kind: input, shape index: {}]   ;;  %s2578_s1 = inlined_call_operand.vmem [shape: f32[2,8,256], index: 1, kind: input, shape index: {}]   ;;  %s2579_s2 = inlined_call_operand.vmem [shape: f32[4,8,128], index: 2, kind: input, shape index: {}]   ;;  %s2580_s3 = inlined_call_operand.vmem [shape: f32[2,9,128], index: 3, kind: input, shape index: {}]   ;;  %s2581_s4 = inlined_call_operand.vmem [shape: f32[24,8], index: 4, kind: input, shape index: {}]   ;;  %s2582_s5 = inlined_call_operand.vmem [shape: f32[24,1], index: 5, kind: input, shape index: {}]   ;;  %s2583_s6 = inlined_call_operand.vmem [shape: f32[9,8,24], index: 6, kind: input, shape index: {}]   ;;  %s2584_s7 = inlined_call_operand.vmem [shape: f32[8,1], index: 7, kind: input, shape index: {}]   ;;  %s2585_s8 = inlined_call_operand.hbm [shape: f32[2,8,256], index: 8, kind: output, shape index: {}]  }
   0x1   :  { %2589 = sst [smem:[#allocation11_spill]] %s2577_s0 }
   0x2   :  { %13 = vsyncpa [#allocation4], 0 }
   0x3   :  { %14 = vsyncpa [#allocation3], 0 }
   0x4   :  { %16 = vsyncpa [#allocation3 + $0x1], 0  ;;  %s2213_s27 = smov 0   ;;  %s2215_s28 = smov 0  }
   0x5   :  { %s2217_s29 = smov 0   ;;  %s2219_s30 = smov 0  }
   0x6   :  { %s2221_s9 = smov 0   ;;  %s2223_s10 = smov 0  }
   0x7   :  { %s2225_s11 = smov 0   ;;  %s2227_s12 = smov 0  }
   0x8 LB: > { %2590 = sst [smem:[#allocation8_spill]] %s2143_s11  ;;  %s1635_s13 = sadd.s32 4294967295, %s2147_s12   ;;  %s2147_s12 = sphi %s2227_s12, %s22_s12   ;;  %s2143_s11 = sphi %s2225_s11, %s2601_s11   ;;  %s2139_s10 = sphi %s2223_s10, %s2606_s10   ;;  %s2135_s9 = sphi %s2221_s9, %s2599_s9   ;;  %s2131_s30 = sphi %s2219_s30, %s2605_s30   ;;  %s2127_s29 = sphi %s2217_s29, %s2604_s29   ;;  %s2123_s28 = sphi %s2215_s28, %s2603_s28   ;;  %s2119_s27 = sphi %s2213_s27, %s2602_s27  }
   0x9   : > { %s1636_s14 = sadd.s32 4294967294, %s2147_s12   ;;  %s31_s15 = sadd.s32 1, %s2139_s10 }
   0xa   : > { %s34_s16 = sadd.s32 1, %s2143_s11  ;;  %p32_p0 = scmp.ge.s32.totalorder %s31_s15, 2 }
   0xb   : > { %s232_s17 = sadd.s32 1, %s2127_s29  ;;  %p242_p1 = scmp.ne.s32.totalorder %s2127_s29, %s2123_s28 }
   0xc   : > { %p243_p2 = scmp.eq.s32.totalorder %s1635_s13, 3  ;;  %s2608_s15 = smov (%p32_p0, %s31_s15), 0 }
   0xd   : > { %2591 = sst [smem:[#allocation9_spill]] %s2608_s15  ;;  %s2610_s16 = smov (!%p32_p0, %s34_s16), %s2143_s11 }
   0xe   : > { %s227_s18 = ssub.s32 %s2139_s10, %s2608_s15  ;;  %p2265_p3 = por %p243_p2, %p242_p1 }
   0xf   : > { %p36_p4 = scmp.ge.s32.totalorder %s2610_s16, 2  ;;  %p248_p5 = scmp.ne.s32.totalorder %s2123_s28, %s2119_s27 }
  0x10   : > { %p249_p6 = scmp.eq.s32.totalorder %s1636_s14, 3  ;;  %p1639_p7 = scmp.ge.s32.totalorder %s2147_s12, 1 }
  0x11   : > { %s2612_s16 = smov (%p36_p4, %s2610_s16), 0  ;;  %p256_p9 = scmp.lt.s32.totalorder %s2147_s12, 5 }
  0x12   : > { %2593 = sst [smem:[#allocation10_spill]] %s2612_s16  ;;  %p2274_p8 = por %p249_p6, %p248_p5 }
  0x13   : > { %s228_s21 = ssub.s32 %s2143_s11, %s2612_s16  ;;  %p2281_p10 = pnand %p1639_p7, %p256_p9 }
  0x14   : > { %s2594_s20 = scalar_select %p2274_p8, 1, 0 }
  0x15   : > { %s229_s22 = sor.u32 %s228_s21, %s227_s18  ;;  %p2285_p12 = scmp.eq.s32.totalorder %s1635_s13, 0 }
  0x16   : > { %p230_p11 = scmp.eq.s32.totalorder %s229_s22, 0  ;;  %p1864_p13 = pneg %p2281_p10 }
  0x17   : > { %s2597_s0 = sld [smem:[#allocation11_spill]] }
  0x18   : > { %s2295_s15 = scalar_select %p230_p11, %s2127_s29, %s232_s17  }
  0x19   : > { %p1865_p0 = pnand %p2285_p12, %p1864_p13 }
  0x1b   : > { %p2036_p2 = pneg %p1865_p0 }
  0x1d   : > { %s269_s14 = sshll.u32 %s2597_s0, 4  ;;  %s270_s14 = int_to_ptr.vmem [resolvable:$true] %s269_s14 }
  0x1e   : > { %s2034_s18 = scalar_lea.vmem %s270_s14, 16  ;;  %p2042_p6 = scmp.lt.s32.totalorder %s270_s14, %s270_s14 }
  0x1f   : > { %p2035_p1 = scmp.ne.s32.totalorder %s270_s14, %s2034_s18  ;;  %p2043_p7 = scmp.lt.s32.totalorder %s2034_s18, %s2034_s18 }
  0x21   : > { %p2037_p4 = pnand %p2036_p2, %p2035_p1  ;;  %p2044_p9 = por %p2043_p7, %p2042_p6 }
  0x23   : > { %p2038_p5 = pneg %p2037_p4 }
  0x25   : > { %p2045_p8 = pnand %p2044_p9, %p2038_p5 }
  0x27   : > { %2048 = shalt.err (!%p2045_p8)
}
  0x28   : > { %s2149_s13 = smov [#allocation2]   ;;  %324 = sbr.rel (%p2281_p10) target bundleno = 685 (0x2ad), region = 52 }
  0x29   : > { %1867 = dma.vmem_to_smem (!%p1865_p0), %s270_s14, 16, %s2149_s13, [#allocation4]  }
  0x2f   : > { %2110 = dma.done.wait (%p2285_p12), [#allocation4], 16  }
  0x30   : > { %2112 = vsyncadd (%p2285_p12), [#allocation4], 4294967280 }
  0x31   : > { %330 = sfence }
  0x32   : > { %p373_p11 = scmp.lt.s32.totalorder %s2131_s30, 1  ;;  %p375_p13 = scmp.lt.s32.totalorder %s2135_s9, 1  ;;  %v2150_v0 = vmov 0.0   ;;  %vm2151_vm0 = vmmov 0   ;;  %v399_v1 = vld [vmem:[%s2582_s5] sm:$0xff]  ;;  %v401_v2 = vld [vmem:[%s2582_s5 + $0x10] sm:$0xff] }
  0x33   : > { %1726 = vmatprep.subr.mxu0 %v2150_v0  ;;  %1856 = vmatprep.subr.mxu1 %v2150_v0  ;;  %s1647_s17 = sshll.u32 %s2131_s30, 1  ;;  %v2152_v3 = vmov 0   ;;  %v400_v4 = vld [vmem:[%s2582_s5 + $0x8] sm:$0xff]  ;;  %v396_v5 = vld [vmem:[%s2581_s4] sm:$0xff]  ;;  %vm417_vm1 = vcmask 64512   ;;  %v398_v6 = vld [vmem:[%s2581_s4 + $0x10] sm:$0xff] }
  0x34   : > { %s2614_s30 = smov (!%p373_p11, %s2131_s30), 1  ;;  %1728 = vmatprep.mubr.msk.f32.mxu0 %vm2151_vm0, %v2150_v0  ;;  %1734 = vmatprep.mubr.msk.f32.mxu1 %vm2151_vm0, %v2150_v0  ;;  %s2325_s14 = sadd.s32 %s2135_s9, %s1647_s17  ;;  %v397_v8 = vld [vmem:[%s2581_s4 + $0x8] sm:$0xff]  ;;  %v2153_v17 = vmov 0.0|0.0   ;;  %v1490_v35 = vld [vmem:[%s2584_s7] sm:$0xff]  ;;  %vm602_vm2 = vcmask 138240   ;;  %vm606_vm3 = vcmask 195584  }
  0x35   : > { %s2322_s25 = scalar_select %p375_p13, %s2135_s9, 1  ;;  %1957 = vset.pattern.permute.xlu0 %v2152_v3  ;;  %1958 = vset.pattern.permute.xlu1 %v2152_v3  ;;  %v589_v49 = vld [vmem:[%s2583_s6] sm:$0xff]  ;;  %vm708_vm4 = vcmask 130048   ;;  %vm811_vm5 = vcmask 121856   ;;  %vm914_vm6 = vcmask 7168   ;;  %vm1098_vm7 = vcmask 1039360  }
  0x36   : > { %s1645_s26 = sshll.u32 %s2614_s30, 1  ;;  %404 = vperm.xlu0 %1957, %v399_v1   ;;  %414 = vperm.xlu1 %1958, %v401_v2   ;;  %p383_p8 = scmp.lt.s32.totalorder %s2325_s14, 3  ;;  %vm1201_vm8 = vcmask 924672   ;;  %vm1304_vm9 = vcmask 916480   ;;  %vm1407_vm10 = vcmask 908288  }
  0x37   : > { %s378_s18 = sadd.s32 %s1645_s26, %s2322_s25  ;;  %s2154_s21 = smov 17  }
  0x38   : > { %s1646_s22 = sshll.u32 %s378_s18, 3  ;;  %s2156_s23 = smov 16  }
  0x39   : > { %s380_s0 = scalar_lea.vmem %s2578_s1, %s1646_s22  ;;  %s2155_s22 = smov 127  }
  0x3a   : > { %v2341_v7 = vld [vmem:[%s380_s0] sm:$0xff]  ;;  %s384_s17 = scalar_select %p383_p8, %s2325_s14, 3  ;;  %409 = vperm.xlu0 %1957, %v400_v4  }
  0x3b   : > { %1727 = vmatpush3.msra.mxu0 %v2341_v7  ;;  %1857 = vmatpush3.msra.mxu1 %v2341_v7  ;;  %s2157_s24 = smov 15   ;;  %s2158_s30 = smov 1  }
  0x3c   : > { %1729 = vmatmul.mubr.msk.f32.vlgmr.msra.gmra.mrb[0].mxu0 %vm417_vm1, %v396_v5  ;;  %1735 = vmatmul.mubr.msk.f32.vlgmr.msra.gmra.mrb[0].mxu1 %vm417_vm1, %v398_v6  ;;  %s1648_s26 = sshll.u32 %s384_s17, 3  ;;  %s2159_s9 = smov 113  }
  0x3d   : > { %1737 = vmatprep.subr.mxu1 %v2150_v0  ;;  %1731 = vmatprep.mubr.msk.f32.mxu0 %vm2151_vm0, %v2150_v0  ;;  %s386_s0 = scalar_lea.vmem %s2579_s2, %s1648_s26  ;;  %s2160_s17 = smov 112  }
  0x3e   : > { %v395_v9 = vld [vmem:[%s386_s0] sm:$0xff]  ;;  %1739 = vmatprep.mubr.msk.f32.mxu1 %vm2151_vm0, %v2150_v0  ;;  %1829 = vmatprep.subr.bf16.mxu0 %v2153_v17  ;;  %s2161_s26 = smov 126   ;;  %s2162_s11 = smov 110  }
  0x3f   : > { %1738 = vmatpush3.msra.mxu1 %v395_v9  ;;  %s2163_s16 = smov 96   ;;  %s2164_s0 = smov 95  }
  0x40   : > { %1732 = vmatmul.mubr.msk.f32.gmra.mrb[2].mxu0 %vm417_vm1, %v397_v8  ;;  %1740 = vmatmul.mubr.msk.f32.vlgmr.msra.gmra.mrb[2].mxu1 %vm417_vm1, %v396_v5  ;;  %s2165_s18 = smov 94   ;;  %s2166_s13 = smov 111  }
  0x41   : > { %1742 = vmatprep.mubr.msk.f32.mxu1 %vm2151_vm0, %v2150_v0  ;;  %1754 = vmatprep.mubr.msk.f32.mxu0 %vm2151_vm0, %v2150_v0 }
  0x42   : > { %1832 = vmatprep.subr.bf16.mxu1 %v2153_v17 }
  0x44   : > { %1743 = vmatmul.mubr.msk.f32.gmra.mrb[4].mxu1 %vm417_vm1, %v397_v8 }
  0x45   : > { %1745 = vmatprep.mubr.msk.f32.mxu1 %vm2151_vm0, %v2150_v0 }
  0x48   : > { %1746 = vmatmul.mubr.msk.f32.gmra.mrb[6].mxu1 %vm417_vm1, %v398_v6 }
  0x49   : > { %1763 = vmatprep.mubr.msk.f32.mxu1 %vm2151_vm0, %v2150_v0 }
  0xb5   : > { %v405_v10 = vpop.permute.xlu0 %404  ;;  %v415_v11 = vpop.permute.xlu1 %414 }
  0xb9   : > { %v410_v18 = vpop.permute.xlu0 %409 }
 0x10f   : > { %v493_v12 = vpop.f32.mrb[0].mxu0  ;;  %v503_v13 = vpop.f32.mrb[0].mxu1 }
 0x110   : > { %v2371_v14 = vadd.f32 %v503_v13, %v415_v11  ;;  %v1730_v15 = vpop.f32.mrb[1].mxu0  ;;  %v1736_v16 = vpop.f32.mrb[1].mxu1  ;;  %v2378_v21 = vadd.f32 %v493_v12, %v405_v10 }
 0x112   : > { %597 = vrot.lane.b32.xlu0 %v2371_v14, %s2154_s21  ;;  %1084 = vrot.lane.b32.xlu1 %v2371_v14, %s2155_s22 }
 0x113   : > { %v498_v19 = vpop.f32.mrb[2].mxu0  ;;  %v573_v20 = vpop.f32.mrb[2].mxu1 }
 0x114   : > { %v2380_v22 = vadd.f32 %v498_v19, %v410_v18  ;;  %v1733_v23 = vpop.f32.mrb[3].mxu0  ;;  %v1741_v24 = vpop.f32.mrb[3].mxu1  ;;  %v574_v32 = vadd.f32 %v573_v20, %v405_v10 }
 0x115   : > { %v1658_v23 = vld [vmem:[%s2583_s6 + $0x8] sm:$0xff] }
 0x116   : > { %703 = vrot.lane.b32.xlu0 %v2371_v14, %s2156_s23  ;;  %v1959_v25 = vpack.i.bf16 %v2380_v22, %v2378_v21  ;;  %v1842_v28 = vpack.c.bf16 %v2380_v22, %v2378_v21 }
 0x117   : > { %v578_v26 = vpop.f32.mrb[4].mxu1 }
 0x118   : > { %1960 = vrot.lane.b32.xlu1 %v1959_v25, %s2154_s21  ;;  %v1744_v27 = vpop.f32.mrb[5].mxu1  ;;  %v579_v31 = vadd.f32 %v578_v26, %v410_v18 }
 0x11a   : > { %806 = vrot.lane.b32.xlu0 %v2371_v14, %s2157_s24  ;;  %v1994_v33 = vpack.i.bf16 %v579_v31, %v574_v32 }
 0x11b   : > { %v583_v29 = vpop.f32.mrb[6].mxu1 }
 0x11c   : > { %1965 = vrot.lane.b32.xlu1 %v1959_v25, %s2156_s23  ;;  %v1747_v30 = vpop.f32.mrb[7].mxu1  ;;  %v584_v34 = vadd.f32 %v583_v29, %v415_v11 }
 0x11e   : > { %909 = vrot.lane.b32.xlu0 %v2371_v14, %s2158_s30 }
 0x120   : > { %1980 = vrot.lane.b32.xlu1 %v1959_v25, %s2155_s22 }
 0x122   : > { %1970 = vrot.lane.b32.xlu0 %v1959_v25, %s2157_s24 }
 0x124   : > { %1985 = vrot.lane.b32.xlu1 %v1959_v25, %s2159_s9 }
 0x126   : > { %1975 = vrot.lane.b32.xlu0 %v1959_v25, %s2158_s30 }
 0x128   : > { %1990 = vrot.lane.b32.xlu1 %v1959_v25, %s2160_s17 }
 0x12a   : > { %1995 = vrot.lane.b32.xlu0 %v1994_v33, %s2155_s22 }
 0x12c   : > { %2000 = vrot.lane.b32.xlu1 %v1994_v33, %s2161_s26 }
 0x12e   : > { %2010 = vrot.lane.b32.xlu0 %v1994_v33, %s2162_s11 }
 0x130   : > { %2005 = vrot.lane.b32.xlu1 %v1994_v33, %s2160_s17 }
 0x132   : > { %2015 = vrot.lane.b32.xlu0 %v1994_v33, %s2163_s16 }
 0x134   : > { %694 = vrot.lane.b32.xlu1 %v584_v34, %s2155_s22  ;;  %s1678_s22 = sshll.u32 %s2325_s14, 7  ;;  %s2167_s14 = smov [#allocation5]  }
 0x136   : > { %2020 = vrot.lane.b32.xlu0 %v1994_v33, %s2164_s0 }
 0x138   : > { %797 = vrot.lane.b32.xlu1 %v584_v34, %s2161_s26  ;;  %s1681_s26 = sshll.u32 %s2322_s25, 4  ;;  %s1497_s25 = sld [smem:[#allocation2]] }
 0x13a   : > { %2030 = vrot.lane.b32.xlu0 %v1994_v33, %s2165_s18 }
 0x13c   : > { %900 = vrot.lane.b32.xlu1 %v584_v34, %s2160_s17 }
 0x13e   : > { %1093 = vrot.lane.b32.xlu0 %v584_v34, %s2162_s11 }
 0x140   : > { %1187 = vrot.lane.b32.xlu1 %v2371_v14, %s2159_s9 }
 0x142   : > { %1196 = vrot.lane.b32.xlu0 %v584_v34, %s2163_s16  ;;  %s2053_s16 = sshll.u32 %s2167_s14, 4  ;;  %s2054_s16 = int_to_ptr.vmem [resolvable:$false] %s2053_s16 }
 0x144   : > { %2025 = vrot.lane.b32.xlu1 %v1959_v25, %s2166_s13 }
 0x146   : > { %1299 = vrot.lane.b32.xlu0 %v584_v34, %s2164_s0  ;;  %s2514_s0 = scalar_lea.vmem %s2580_s3, %s1681_s26 }
 0x148   : > { %1290 = vrot.lane.b32.xlu1 %v2371_v14, %s2160_s17  ;;  %s2524_s17 = scalar_lea.hbm %s2585_s8, %s1678_s22 }
 0x14a   : > { %1402 = vrot.lane.b32.xlu0 %v584_v34, %s2165_s18  ;;  %s1675_s18 = sld [smem:[#allocation2 + $0x1]] }
 0x14c   : > { %1393 = vrot.lane.b32.xlu1 %v2371_v14, %s2166_s13  ;;  %s370_s13 = sand.u32 1, %s2123_s28  }
 0x14d   : > { %s1644_s21 = sshll.u32 %s370_s13, 3  ;;  %s1506_s26 = scalar_lea.sflag [#allocation3], %s370_s13 }
 0x14e   : > { %s372_s23 = scalar_lea.vmem [#allocation5], %s1644_s21 }
 0x14f   : > { %s1521_s24 = sshll.u32 %s372_s23, 4  ;;  %s2526_s24 = int_to_ptr.vmem [resolvable:$true] %s1521_s24 }
 0x150   : > { %1493 = vperm.xlu1 %1958, %v1490_v35   ;;  %s2049_s11 = scalar_lea.vmem %s2526_s24, 128  ;;  %p2056_p1 = scmp.lt.s32.totalorder %s2526_s24, %s2054_s16 }
 0x151   : > { %p2050_p10 = scmp.ne.s32.totalorder %s2526_s24, %s2049_s11 }
 0x153   : > { %p2051_p12 = pnand %p2050_p10, %p2265_p3 }
 0x155   : > { %p2052_p0 = pneg %p2051_p12 }
 0x184   : > { %v598_v36 = vpop.permute.xlu0 %597  ;;  %v2398_v37 = vpop.permute.xlu1 %1084 }
 0x185   : > { %v605_v50 = vsel %vm602_vm2, %v584_v34, %v598_v36 }
 0x188   : > { %v704_v38 = vpop.permute.xlu0 %703 }
 0x18a   : > { %v1961_v39 = vpop.permute.xlu1 %1960 }
 0x18b   : > { %v1963_v40 = vunpack.i.h.bf16 %v1961_v39  ;;  %v1962_v41 = vunpack.i.l.bf16 %v1961_v39 }
 0x18c   : > { %v2400_v42 = vpop.permute.xlu0 %806 }
 0x18d   : > { %v604_v43 = vsel %vm602_vm2, %v579_v31, %v1963_v40  ;;  %v603_v44 = vsel %vm602_vm2, %v574_v32, %v1962_v41  ;;  %v1660_v32 = vld [vmem:[%s2583_s6 + $0x10] sm:$0xff] }
 0x18e   : > { %v1830_v45 = vpack.c.bf16 %v604_v43, %v603_v44  ;;  %v1966_v46 = vpop.permute.xlu1 %1965 }
 0x18f   : > { %v1968_v56 = vunpack.i.h.bf16 %v1966_v46  ;;  %v1967_v57 = vunpack.i.l.bf16 %v1966_v46 }
 0x190   : > { %v2402_v47 = vpop.permute.xlu0 %909  ;;  %1831 = vmatpush3.bf16.msra.mxu0 %v1830_v45 }
 0x191   : > { %1752 = vmatprep.subr.mxu0 %v2150_v0 }
 0x192   : > { %v2405_v48 = vpop.permute.xlu1 %1980 }
 0x193   : > { %v1983_v33 = vunpack.i.h.bf16 %v2405_v48  ;;  %v1982_v34 = vunpack.i.l.bf16 %v2405_v48 }
 0x194   : > { %v1971_v51 = vpop.permute.xlu0 %1970  ;;  %1753 = vmatpush3.msra.mxu0 %v605_v50 }
 0x195   : > { %1835 = vmatprep.subr.bf16.mxu0 %v2153_v17  ;;  %1755 = vmatmul.mubr.msk.f32.vlgmr.msra.gmra.mrb[4].mxu0 %vm606_vm3, %v589_v49  ;;  %v1973_v60 = vunpack.i.h.bf16 %v1971_v51  ;;  %v1972_v61 = vunpack.i.l.bf16 %v1971_v51 }
 0x196   : > { %v2412_v52 = vpop.permute.xlu1 %1985  ;;  %1772 = vmatprep.mubr.msk.f32.mxu0 %vm2151_vm0, %v2150_v0 }
 0x197   : > { %v1988_v40 = vunpack.i.h.bf16 %v2412_v52 }
 0x198   : > { %v1976_v53 = vpop.permute.xlu0 %1975 }
 0x199   : > { %v1978_v11 = vunpack.i.h.bf16 %v1976_v53  ;;  %v1977_v12 = vunpack.i.l.bf16 %v1976_v53 }
 0x19a   : > { %v2416_v54 = vpop.permute.xlu1 %1990 }
 0x19b   : > { %v1993_v51 = vunpack.i.h.bf16 %v2416_v54 }
 0x19c   : > { %v1996_v55 = vpop.permute.xlu0 %1995 }
 0x19d   : > { %v1998_v58 = vunpack.i.h.bf16 %v1996_v55  ;;  %v1997_v59 = vunpack.i.l.bf16 %v1996_v55 }
 0x19e   : > { %v2001_v62 = vpop.permute.xlu1 %2000 }
 0x19f   : > { %v709_v63 = vsel %vm708_vm4, %v1997_v59, %v1967_v57  ;;  %v710_v1 = vsel %vm708_vm4, %v1998_v58, %v1968_v56  ;;  %v2003_v2 = vunpack.i.h.bf16 %v2001_v62  ;;  %v2002_v3 = vunpack.i.l.bf16 %v2001_v62 }
 0x1a0   : > { %v1833_v4 = vpack.c.bf16 %v710_v1, %v709_v63  ;;  %v2011_v5 = vpop.permute.xlu0 %2010 }
 0x1a1   : > { %v813_v6 = vsel %vm811_vm5, %v2003_v2, %v1973_v60  ;;  %v812_v8 = vsel %vm811_vm5, %v2002_v3, %v1972_v61  ;;  %v2013_v27 = vunpack.i.h.bf16 %v2011_v5  ;;  %v2012_v29 = vunpack.i.l.bf16 %v2011_v5  ;;  %v1668_v61 = vld [vmem:[%s2583_s6 + $0x30] sm:$0xff] }
 0x1a2   : > { %v1836_v9 = vpack.c.bf16 %v813_v6, %v812_v8  ;;  %v2006_v10 = vpop.permute.xlu1 %2005  ;;  %1834 = vmatpush3.bf16.msra.mxu1 %v1833_v4  ;;  %v1670_v8 = vld [vmem:[%s2583_s6 + $0x38] sm:$0xff] }
 0x1a3   : > { %v2008_v13 = vunpack.i.h.bf16 %v2006_v10  ;;  %v2007_v15 = vunpack.i.l.bf16 %v2006_v10  ;;  %1761 = vmatprep.subr.mxu1 %v2150_v0  ;;  %v1099_v41 = vsel %vm1098_vm7, %v1982_v34, %v2012_v29  ;;  %v1100_v43 = vsel %vm1098_vm7, %v1983_v33, %v2013_v27 }
 0x1a4   : > { %v2016_v16 = vpop.permute.xlu0 %2015  ;;  %1837 = vmatpush3.bf16.msra.mxu0 %v1836_v9  ;;  %v1845_v22 = vpack.c.bf16 %v1100_v43, %v1099_v41 }
 0x1a5   : > { %v916_v18 = vsel %vm914_vm6, %v2008_v13, %v1978_v11  ;;  %v915_v19 = vsel %vm914_vm6, %v2007_v15, %v1977_v12  ;;  %1770 = vmatprep.subr.mxu0 %v2150_v0  ;;  %v2017_v30 = vunpack.i.l.bf16 %v2016_v16  ;;  %v2018_v35 = vunpack.i.h.bf16 %v2016_v16  ;;  %v1672_v11 = vld [vmem:[%s2583_s6 + $0x40] sm:$0xff] }
 0x1a6   : > { %v695_v20 = vpop.permute.xlu1 %694  ;;  %v1839_v25 = vpack.c.bf16 %v916_v18, %v915_v19  ;;  %v680_v16 = vlaneseq  ;;  %v587_v19 = vld [vmem:[%s2514_s0] sm:$0xff] }
 0x1a7   : > { %v711_v24 = vsel %vm708_vm4, %v695_v20, %v704_v38  ;;  %v1987_v38 = vunpack.i.l.bf16 %v2412_v52  ;;  %v1203_v50 = vsel %vm1201_vm8, %v1988_v40, %v2018_v35  ;;  %v1992_v52 = vunpack.i.l.bf16 %v2416_v54  ;;  %v1666_v54 = vld [vmem:[%s2583_s6 + $0x28] sm:$0xff] }
 0x1a8   : > { %v2021_v26 = vpop.permute.xlu0 %2020  ;;  %1762 = vmatpush3.msra.mxu1 %v711_v24  ;;  %v681_v18 = vshrl.u32 %v680_v16, 7 }
 0x1a9   : > { %1838 = vmatprep.subr.bf16.mxu1 %v2153_v17  ;;  %1764 = vmatmul.mubr.msk.f32.vlgmr.msra.gmra.mrb[8].mxu1 %vm606_vm3, %v1658_v23  ;;  %v1202_v45 = vsel %vm1201_vm8, %v1987_v38, %v2017_v30  ;;  %v2023_v46 = vunpack.i.h.bf16 %v2021_v26  ;;  %v2022_v48 = vunpack.i.l.bf16 %v2021_v26 }
 0x1aa   : > { %v798_v31 = vpop.permute.xlu1 %797  ;;  %1840 = vmatpush3.bf16.msra.mxu1 %v1839_v25  ;;  %1781 = vmatprep.mubr.msk.f32.mxu1 %vm2151_vm0, %v2150_v0  ;;  %v1848_v53 = vpack.c.bf16 %v1203_v50, %v1202_v45  ;;  %v787_v20 = vsub.s32 1, %v681_v18  ;;  %v890_v25 = vsub.s32 2, %v681_v18  ;;  %v1074_v34 = vsub.s32 4, %v681_v18 }
 0x1ab   : > { %v814_v36 = vsel %vm811_vm5, %v798_v31, %v2400_v42  ;;  %1779 = vmatprep.subr.mxu1 %v2150_v0  ;;  %v1662_v42 = vld [vmem:[%s2583_s6 + $0x18] sm:$0xff]  ;;  %v1305_v55 = vsel %vm1304_vm9, %v1992_v52, %v2022_v48  ;;  %v1306_v56 = vsel %vm1304_vm9, %v1993_v51, %v2023_v46  ;;  %v1177_v43 = vsub.s32 5, %v681_v18 }
 0x1ac   : > { %v2031_v39 = vpop.permute.xlu0 %2030  ;;  %1771 = vmatpush3.msra.mxu0 %v814_v36  ;;  %v1851_v58 = vpack.c.bf16 %v1306_v56, %v1305_v55  ;;  %v788_v24 = vrot.slane %v587_v19, %v787_v20  ;;  %v891_v30 = vrot.slane %v587_v19, %v890_v25  ;;  %v1075_v41 = vrot.slane %v587_v19, %v1074_v34 }
 0x1ad   : > { %1773 = vmatmul.mubr.msk.f32.vlgmr.msra.gmra.mrb[6].mxu0 %vm606_vm3, %v1660_v32  ;;  %1841 = vmatprep.subr.bf16.mxu0 %v2153_v17  ;;  %v2033_v59 = vunpack.i.h.bf16 %v2031_v39  ;;  %v2032_v62 = vunpack.i.l.bf16 %v2031_v39  ;;  %v993_v32 = vsub.s32 3, %v681_v18  ;;  %v1280_v46 = vsub.s32 6, %v681_v18 }
 0x1ae   : > { %v901_v44 = vpop.permute.xlu1 %900  ;;  %1843 = vmatpush3.bf16.msra.mxu0 %v1842_v28  ;;  %1790 = vmatprep.mubr.msk.f32.mxu0 %vm2151_vm0, %v2150_v0  ;;  %v1664_v28 = vld [vmem:[%s2583_s6 + $0x20] sm:$0xff]  ;;  %v1383_v52 = vsub.s32 7, %v681_v18 }
 0x1af   : > { %v917_v49 = vsel %vm914_vm6, %v901_v44, %v2402_v47  ;;  %1788 = vmatprep.subr.mxu0 %v2150_v0  ;;  %v994_v39 = vrot.slane %v587_v19, %v993_v32  ;;  %v1281_v51 = vrot.slane %v587_v19, %v1280_v46 }
 0x1b0   : > { %v1094_v21 = vpop.permute.xlu0 %1093  ;;  %1780 = vmatpush3.msra.mxu1 %v917_v49 }
 0x1b1   : > { %1782 = vmatmul.mubr.msk.f32.vlgmr.msra.gmra.mrb[10].mxu1 %vm606_vm3, %v1662_v42  ;;  %1844 = vmatprep.subr.bf16.mxu1 %v2153_v17 }
 0x1b2   : > { %v1188_v47 = vpop.permute.xlu1 %1187  ;;  %1789 = vmatpush3.msra.mxu0 %v2371_v14  ;;  %1846 = vmatpush3.bf16.msra.mxu1 %v1845_v22  ;;  %v1101_v14 = vsel %vm1098_vm7, %v2398_v37, %v1094_v21  ;;  %v1178_v22 = vrot.slane %v587_v19, %v1177_v43 }
 0x1b3   : > { %1791 = vmatmul.mubr.msk.f32.vlgmr.msra.gmra.mrb[8].mxu0 %vm606_vm3, %v1664_v28  ;;  %1847 = vmatprep.subr.bf16.mxu0 %v2153_v17 }
 0x1b4   : > { %v1197_v57 = vpop.permute.xlu0 %1196  ;;  %1849 = vmatpush3.bf16.msra.mxu0 %v1848_v53  ;;  %1797 = vmatprep.subr.mxu1 %v2150_v0 }
 0x1b5   : > { %1799 = vmatprep.mubr.msk.f32.mxu1 %vm2151_vm0, %v2150_v0  ;;  %1806 = vmatprep.subr.mxu0 %v2150_v0  ;;  %v1204_v37 = vsel %vm1201_vm8, %v1188_v47, %v1197_v57 }
 0x1b6   : > { %v2026_v60 = vpop.permute.xlu1 %2025  ;;  %1798 = vmatpush3.msra.mxu1 %v1101_v14  ;;  %1808 = vmatprep.mubr.msk.f32.mxu0 %vm2151_vm0, %v2150_v0 }
 0x1b7   : > { %v2028_v63 = vunpack.i.h.bf16 %v2026_v60  ;;  %v2027_v1 = vunpack.i.l.bf16 %v2026_v60  ;;  %1800 = vmatmul.mubr.msk.f32.vlgmr.msra.gmra.mrb[12].mxu1 %vm606_vm3, %v1666_v54  ;;  %1850 = vmatprep.subr.bf16.mxu1 %v2153_v17 }
 0x1b8   : > { %v1300_v2 = vpop.permute.xlu0 %1299  ;;  %1807 = vmatpush3.msra.mxu0 %v1204_v37  ;;  %1852 = vmatpush3.bf16.msra.mxu1 %v1851_v58  ;;  %v1384_v58 = vrot.slane %v587_v19, %v1383_v52  ;;  %v1674_v37 = vld [vmem:[%s2514_s0 + $0x8] ss:$0 sm:$0xff]  ;;  %s2055_s0 = scalar_lea.vmem %s2054_s16, 256 }
 0x1b9   : > { %v1409_v3 = vsel %vm1407_vm10, %v2028_v63, %v2033_v59  ;;  %v1408_v4 = vsel %vm1407_vm10, %v2027_v1, %v2032_v62  ;;  %1809 = vmatmul.mubr.msk.f32.vlgmr.msra.gmra.mrb[10].mxu0 %vm606_vm3, %v1668_v61  ;;  %1815 = vmatprep.subr.mxu1 %v2150_v0  ;;  %p2057_p2 = scmp.lt.s32.totalorder %s2055_s0, %s2049_s11 }
 0x1ba   : > { %v1854_v5 = vpack.c.bf16 %v1409_v3, %v1408_v4  ;;  %v1291_v6 = vpop.permute.xlu1 %1290  ;;  %1853 = vmatprep.subr.bf16.mxu0 %v2153_v17  ;;  %1817 = vmatprep.mubr.msk.f32.mxu1 %vm2151_vm0, %v2150_v0  ;;  %v1498_v4 = vstv %s1497_s25 }
 0x1bb   : > { %v1307_v9 = vsel %vm1304_vm9, %v1291_v6, %v1300_v2  ;;  %1826 = vmatprep.mubr.msk.f32.mxu0 %vm2151_vm0, %v2150_v0  ;;  %p2058_p4 = por %p2057_p2, %p2056_p1 }
 0x1bc   : > { %1816 = vmatpush3.msra.mxu1 %v1307_v9  ;;  %1855 = vmatpush3.bf16.msra.mxu0 %v1854_v5  ;;  %v1403_v17 = vpop.permute.xlu0 %1402  ;;  %v1499_v9 = vmul.f32 %v1498_v4, %v2341_v7 }
 0x1bd   : > { %1818 = vmatmul.mubr.msk.f32.vlgmr.msra.gmra.mrb[14].mxu1 %vm606_vm3, %v1670_v8  ;;  %1824 = vmatprep.subr.mxu0 %v2150_v0  ;;  %v682_v0 = vsub.s32 0, %v681_v18  ;;  %v1501_v8 = vstv %s1675_s18  ;;  %p2059_p5 = pnand %p2058_p4, %p2052_p0 }
 0x1be   : > { %v1394_v10 = vpop.permute.xlu1 %1393 }
 0x1bf   : > { %v1410_v12 = vsel %vm1407_vm10, %v1394_v10, %v1403_v17  ;;  %v683_v23 = vrot.slane %v587_v19, %v682_v0 }
 0x1c0   : > { %1825 = vmatpush3.msra.mxu0 %v1410_v12 }
 0x1c1   : > { %1827 = vmatmul.mubr.msk.f32.vlgmr.msra.gmra.mrb[12].mxu0 %vm606_vm3, %v1672_v11 }
 0x1cf   : > { %v1494_v6 = vpop.permute.xlu1 %1493 }
 0x268   : > { %v676_v13 = vpop.f32.mrb[4].mxu0 }
 0x269   : > { %v1756_v15 = vpop.f32.mrb[5].mxu0  ;;  %v684_v26 = vmul.f32 %v683_v23, %v676_v13 }
 0x27c   : > { %v781_v27 = vpop.f32.mrb[8].mxu1 }
 0x27d   : > { %v789_v29 = vmul.f32 %v788_v24, %v781_v27  ;;  %v1765_v31 = vpop.f32.mrb[9].mxu1 }
 0x27f   : > { %v790_v33 = vadd.f32 %v789_v29, %v684_v26 }
 0x280   : > { %v884_v35 = vpop.f32.mrb[6].mxu0 }
 0x281   : > { %v892_v36 = vmul.f32 %v891_v30, %v884_v35  ;;  %v1774_v38 = vpop.f32.mrb[7].mxu0 }
 0x283   : > { %v893_v40 = vadd.f32 %v892_v36, %v790_v33 }
 0x284   : > { %v987_v44 = vpop.f32.mrb[10].mxu1 }
 0x285   : > { %v995_v42 = vmul.f32 %v994_v39, %v987_v44  ;;  %v1783_v45 = vpop.f32.mrb[11].mxu1 }
 0x286   : > { %v1068_v48 = vpop.f32.mrb[8].mxu0 }
 0x287   : > { %v996_v49 = vadd.f32 %v995_v42, %v893_v40  ;;  %v1076_v50 = vmul.f32 %v1075_v41, %v1068_v48  ;;  %v1792_v21 = vpop.f32.mrb[9].mxu0 }
 0x289   : > { %v1077_v28 = vadd.f32 %v1076_v50, %v996_v49 }
 0x28a   : > { %v1171_v47 = vpop.f32.mrb[12].mxu1 }
 0x28b   : > { %v1179_v53 = vmul.f32 %v1178_v22, %v1171_v47  ;;  %v1801_v55 = vpop.f32.mrb[13].mxu1 }
 0x28c   : > { %v1274_v56 = vpop.f32.mrb[10].mxu0 }
 0x28d   : > { %v1180_v57 = vadd.f32 %v1179_v53, %v1077_v28  ;;  %v1282_v54 = vmul.f32 %v1281_v51, %v1274_v56  ;;  %v1810_v14 = vpop.f32.mrb[11].mxu0 }
 0x28f   : > { %v1283_v59 = vadd.f32 %v1282_v54, %v1180_v57 }
 0x290   : > { %v1377_v60 = vpop.f32.mrb[14].mxu1 }
 0x291   : > { %v1385_v61 = vmul.f32 %v1384_v58, %v1377_v60  ;;  %v1819_v62 = vpop.f32.mrb[15].mxu1 }
 0x293   : > { %v1386_v63 = vadd.f32 %v1385_v61, %v1283_v59 }
 0x294   : > { %v1480_v1 = vpop.f32.mrb[12].mxu0 }
 0x295   : > { %v1488_v2 = vmul.f32 %v1674_v37, %v1480_v1  ;;  %v1828_v3 = vpop.f32.mrb[13].mxu0 }
 0x297   : > { %v1489_v5 = vadd.f32 %v1488_v2, %v1386_v63 }
 0x299   : > { %v1496_v17 = vadd.f32 %v1494_v6, %v1489_v5 }
 0x29b   : > { %v1502_v10 = vmul.f32 %v1501_v8, %v1496_v17 }
 0x29d   : > { %v1503_v11 = vadd.f32 %v1502_v10, %v1499_v9 }
 0x29f   : > { %1504 = vst [vmem:[%s372_s23] sm:$0xff] %v1503_v11 }
 0x2a0   : > { %2062 = shalt.err (!%p2059_p5)
}
 0x2a1   : > { %s2063_s25 = scalar_lea.hbm %s2524_s17, 128  ;;  %s2067_s21 = scalar_lea.hbm %s2585_s8, 512 }
 0x2a2   : > { %p2064_p6 = scmp.ne.s32.totalorder %s2524_s17, %s2063_s25  ;;  %p2068_p11 = scmp.lt.u32.totalorder %s2524_s17, %s2585_s8 }
 0x2a3   : > { %p2069_p13 = scmp.lt.u32.totalorder %s2067_s21, %s2063_s25  ;;  %p2071_p10 = scmp.lt.u32.totalorder %s2063_s25, %s2524_s17 }
 0x2a4   : > { %p2065_p7 = pnand %p2064_p6, %p2265_p3 }
 0x2a5   : > { %p2070_p8 = por %p2069_p13, %p2068_p11 }
 0x2a6   : > { %p2066_p9 = pneg %p2065_p7 }
 0x2a7   : > { %p2072_p12 = por %p2071_p10, %p2070_p8 }
 0x2a9   : > { %p2073_p0 = pnand %p2072_p12, %p2066_p9 }
 0x2ab   : > { %2076 = shalt.err (!%p2073_p0)
}
 0x2ac   : > { %1862 = dma.vmem_to_hbm [thread:$0]  (%p2265_p3), %s2526_s24, 128, %s2524_s17, %s1506_s26  }
 0x2ad PF: > { %p1874_p1 = scmp.ge.s32.totalorder %s2147_s12, 2  ;;  %s1533_s30 = sand.u32 1, %s2119_s27  }
 0x2ae   : > { %p2598_p2 = scmp.ne.s32.totalorder %s2594_s20, 0  ;;  %s1534_s9 = scalar_lea.sflag [#allocation3], %s1533_s30 }
 0x2b0   : > { %p1869_p4 = pnand %p1874_p1, %p2598_p2 }
 0x2b2   : > { %2114 = dma.done.wait (!%p1869_p4), %s1534_s9, 128  }
 0x2b3   : > { %2116 = vsyncadd (!%p1869_p4), %s1534_s9, 4294967168  ;;  %s22_s12 = sadd.s32 1, %s2147_s12   ;;  %s2599_s9 = sld [smem:[#allocation8_spill]] }
 0x2b4   : > { %p19_p5 = scmp.ge.s32.totalorder %s22_s12, 6   ;;  %s2600_s19 = sld [smem:[#allocation9_spill]] }
 0x2b5   : > { %s2601_s11 = sld [smem:[#allocation10_spill]]  ;;  %s2602_s27 = smov %s2123_s28 }
 0x2b6   : > { %s2603_s28 = smov %s2127_s29  ;;  %s2604_s29 = smov %s2295_s15 }
 0x2b7   : > { %s2605_s30 = smov %s2139_s10  ;;  %21 = sbr.rel (!%p19_p5) target bundleno = 8 (0x8), region = 106 }
 0x2ba   : > { %s2606_s10 = smov %s2600_s19 }
 0x2be   :  { %1539 = vsyncpa [#allocation3], 1 }
 0x2bf   :  { %1541 = vsyncpa [#allocation3 + $0x1], 1 }
 0x2c0   :  { %1542 = vsyncpa [#allocation4], 1 }
 0x2c1   :  { %1544 = vsyncpa [#allocation4 + $0x1], 1 }

</bundles_post_ra>
